<compile_context>
chip_gen: v5e
topology: v5e:2x2
jax: 0.10.0
libtpu: 0.0.40
codegen_flags: <defaults>
</compile_context>

<pallas_src>
import functools

import jax
import jax.numpy as jnp
from jax import lax
from jax.experimental import pallas as pl
from jax.experimental.pallas import tpu as pltpu


def _round_up(a, b):
    return (a + b - 1) // b * b


def _contrastive_tri_kernel(ii_ref, jj_ref, xi_ref, xj_ref, sqi_ref, sqj_ref,
                            yi_ref, yj_ref, out_ref, *, margin, n_valid, tile,
                            last_blk, has_pad):
    t = pl.program_id(0)
    i_blk = ii_ref[t]
    j_blk = jj_ref[t]

    # Single resident accumulator block (constant output index): init once,
    # written back to HBM only after the final grid step.
    @pl.when(t == 0)
    def _():
        out_ref[...] = jnp.zeros_like(out_ref)

    xi = xi_ref[...]                       # (tile, d_pad)
    xj = xj_ref[...]                       # (tile, d_pad)

    # MXU gram tile with f32 accumulation:
    #   norms[a, b] = ||xi_a||^2 + ||xj_b||^2 - 2 * xi_a . xj_b
    gram = lax.dot_general(xi, xj, (((1,), (1,)), ((), ())),
                           preferred_element_type=jnp.float32)    # (tile, tile)
    norms = jnp.maximum(sqi_ref[...] + sqj_ref[...] - 2.0 * gram, 0.0)
    maxims = jnp.maximum(margin - norms, 0.0)
    eq = yi_ref[...] == yj_ref[...]                               # (tile, tile)

    def _part(v):
        # (tile, tile) -> (8, tile): sublane-group-aligned partial sums.
        # Static aligned slices + adds: pure VALU, no XLU, no relayout.
        acc = v[0:8, :]
        for k in range(1, tile // 8):
            acc = acc + v[8 * k:8 * (k + 1), :]
        return acc

    def _accumulate(pos_vals, neg_vals, pos_cnt):
        # 8-row-aligned regions -> unmasked VMEM read-modify-writes.
        out_ref[0:8, :] = out_ref[0:8, :] + _part(pos_vals)
        out_ref[8:16, :] = out_ref[8:16, :] + _part(neg_vals)
        out_ref[16:24, :] = out_ref[16:24, :] + _part(pos_cnt)

    fast = i_blk != j_blk
    if has_pad:
        fast = jnp.logical_and(fast, j_blk != last_blk)

    # Fast path: interior off-diagonal, non-padded tile.  Tiles are square
    # and j_blk > i_blk here, so every element is strictly above the diagonal
    # and in range — only the label mask is needed.
    @pl.when(fast)
    def _():
        _accumulate(jnp.where(eq, norms, 0.0),
                    jnp.where(eq, 0.0, maxims),
                    eq.astype(jnp.float32))

    # Slow path: diagonal tile and/or padded last block.  Keep strictly-upper
    # in-range pairs only (row < col also removes the diagonal).
    @pl.when(jnp.logical_not(fast))
    def _():
        row_g = i_blk * tile + lax.broadcasted_iota(jnp.int32, (tile, tile), 0)
        col_g = j_blk * tile + lax.broadcasted_iota(jnp.int32, (tile, tile), 1)
        keep = row_g < col_g
        if has_pad:
            keep = jnp.logical_and(keep, col_g < n_valid)
        pos_m = jnp.logical_and(eq, keep)
        neg_m = jnp.logical_and(jnp.logical_not(eq), keep)
        _accumulate(jnp.where(pos_m, norms, 0.0),
                    jnp.where(neg_m, maxims, 0.0),
                    pos_m.astype(jnp.float32))


def contrastive_loss(x, y, margin, *, tile=None, use_bf16=None):
    """x: (N, D) float features, y: (N,) int labels. Returns scalar f32 loss.

    NOTE: 0/0 -> NaN when there are no same-label (or no different-label)
    pairs, matching the PyTorch reference behaviour.
    """
    n, d = x.shape
    x = x.astype(jnp.float32)
    y = y.astype(jnp.int32)

    # Lane-dense feature dim (zero columns change neither distances nor norms).
    d_pad = _round_up(d, 128)

    if use_bf16 is None:
        # f32 gram for small D keeps cancellation error negligible; bf16 only
        # where the MXU throughput win matters (large contraction dim).
        use_bf16 = d_pad >= 512
    itemsize = 2 if use_bf16 else 4

    if tile is None:
        tile = 256 if n >= 512 else 128
        # Keep resident xi + pipelined xj buffers + f32 tile temporaries well
        # under the default scoped VMEM limit (incl. v7x's 64 MiB physical).
        while tile > 128 and (6 * tile * d_pad * itemsize
                              + 4 * tile * tile * 4) > (24 << 20):
            tile //= 2

    n_pad = _round_up(n, tile)
    num_blk = n_pad // tile
    pad_n = n_pad - n

    # Linearized upper-triangular (i <= j) block schedule, row-major so the
    # xi row block stays put while xj column blocks stream past.
    ii_host, jj_host = [], []
    for i in range(num_blk):
        for j in range(i, num_blk):
            ii_host.append(i)
            jj_host.append(j)
    num_steps = len(ii_host)
    ii = jnp.asarray(ii_host, dtype=jnp.int32)
    jj = jnp.asarray(jj_host, dtype=jnp.int32)

    sq = jnp.sum(x * x, axis=1)                       # exact f32 ||x_a||^2
    x_pad = jnp.pad(x, ((0, pad_n), (0, d_pad - d)))
    sq_pad = jnp.pad(sq, (0, pad_n))
    y_pad = jnp.pad(y, (0, pad_n))                    # padded rows/cols are masked

    x_in = x_pad.astype(jnp.bfloat16) if use_bf16 else x_pad
    sq_col = sq_pad.reshape(n_pad, 1)
    sq_row = sq_pad.reshape(1, n_pad)
    y_col = y_pad.reshape(n_pad, 1)
    y_row = y_pad.reshape(1, n_pad)

    kernel = functools.partial(
        _contrastive_tri_kernel, margin=float(margin), n_valid=n, tile=tile,
        last_blk=num_blk - 1, has_pad=(pad_n > 0))

    cost = pl.CostEstimate(
        flops=2 * tile * tile * d_pad * num_steps,
        transcendentals=0,
        bytes_accessed=int(num_steps * 2 * tile * d_pad * itemsize
                           + n_pad * (d_pad * itemsize + 12)
                           + 24 * tile * 4))

    partials = pl.pallas_call(
        kernel,
        out_shape=jax.ShapeDtypeStruct((24, tile), jnp.float32),
        grid_spec=pltpu.PrefetchScalarGridSpec(
            num_scalar_prefetch=2,
            grid=(num_steps,),
            in_specs=[
                pl.BlockSpec((tile, d_pad), lambda t, ib, jb: (ib[t], 0)),
                pl.BlockSpec((tile, d_pad), lambda t, ib, jb: (jb[t], 0)),
                pl.BlockSpec((tile, 1), lambda t, ib, jb: (ib[t], 0)),
                pl.BlockSpec((1, tile), lambda t, ib, jb: (0, jb[t])),
                pl.BlockSpec((tile, 1), lambda t, ib, jb: (ib[t], 0)),
                pl.BlockSpec((1, tile), lambda t, ib, jb: (0, jb[t])),
            ],
            out_specs=pl.BlockSpec((24, tile), lambda t, ib, jb: (0, 0)),
        ),
        compiler_params=pltpu.CompilerParams(
            dimension_semantics=("arbitrary",)),
        cost_estimate=cost,
    )(ii, jj, x_in, x_in, sq_col, sq_row, y_col, y_row)

    # Tiny final reductions over the (24, tile) partials.  The strict-upper
    # factor of 1/2 cancels between numerators and denominators.
    pos_num = jnp.sum(partials[0:8, :])
    neg_num = jnp.sum(partials[8:16, :])
    pos_cnt = jnp.sum(partials[16:24, :])
    total_cnt = jnp.float32(n * (n - 1) / 2.0)        # strict-upper pair count
    neg_cnt = total_cnt - pos_cnt
    return 0.5 * (pos_num / pos_cnt + neg_num / neg_cnt)


def _reference(x, y, margin):
    """Literal jnp translation of the PyTorch forward (for verification)."""
    xt = x.T                                               # (D, N)
    emb_dim = xt.shape[1]                                  # N
    first = jnp.tile(xt[None, :, :], (emb_dim, 1, 1))      # (N, D, N)
    second = jnp.transpose(first, (2, 1, 0))               # (N, D, N)
    norms = jnp.sum((first - second) ** 2, axis=1)         # (N, N)
    maxims = jnp.maximum(margin - norms, jnp.zeros_like(norms))
    eqs = (jnp.tile(y[None, :], (y.shape[0], 1))
           - jnp.tile(y[:, None], (1, y.shape[0])))
    eqs = jnp.where(eqs != 0, 0.0, 1.0).astype(jnp.float32)
    eye = jnp.eye(emb_dim, dtype=jnp.float32)
    loss = (((eqs - eye) * norms).sum() / (eqs - eye).sum()
            + ((1.0 - eqs) * maxims).sum() / (1.0 - eqs).sum())
    return loss / 2.0


if __name__ == "__main__":
    key = jax.random.PRNGKey(0)
    k1, k2, k3, k4, k5 = jax.random.split(key, 5)
    margin = 1.0

    # Case 1: small single-tile problem (diagonal / slow path only).
    N1, D1 = 8, 32
    x1 = 0.1 * jax.random.normal(k1, (N1, D1), dtype=jnp.float32)
    y1 = jnp.array([0, 0, 1, 1, 2, 2, 0, 1], dtype=jnp.int32)
    loss1 = contrastive_loss(x1, y1, margin)
    jax.block_until_ready(loss1)
    ref1 = _reference(x1, y1, margin)
    assert jnp.allclose(loss1, ref1, atol=3e-3, rtol=3e-3), (loss1, ref1)

    # Case 2: multi-tile triangular grid (N not a multiple of the tile) —
    # exercises the fast interior path, diagonal tiles, padding masks, and
    # the fused in-kernel pair counting.
    N2, D2 = 300, 64
    x2 = 0.1 * jax.random.normal(k2, (N2, D2), dtype=jnp.float32)
    y2 = jax.random.randint(k3, (N2,), 0, 5, dtype=jnp.int32)
    loss2 = contrastive_loss(x2, y2, margin)
    jax.block_until_ready(loss2)
    ref2 = _reference(x2, y2, margin)
    assert jnp.allclose(loss2, ref2, atol=3e-3, rtol=3e-3), (loss2, ref2)

    # Case 3: bf16 gram path (as auto-selected for large feature dims).
    N3, D3 = 160, 40
    x3 = 0.1 * jax.random.normal(k4, (N3, D3), dtype=jnp.float32)
    y3 = jax.random.randint(k5, (N3,), 0, 4, dtype=jnp.int32)
    loss3 = contrastive_loss(x3, y3, margin, use_bf16=True)
    jax.block_until_ready(loss3)
    ref3 = _reference(x3, y3, margin)
    assert jnp.allclose(loss3, ref3, atol=5e-3, rtol=5e-3), (loss3, ref3)

    print("KERNEL_OK")
</pallas_src>

<mosaic_0001>
module attributes {stable_mosaic.version = 11 : i64} {
  func.func @_contrastive_tri_kernel(%arg0: i32, %arg1: memref<1xi32, #tpu.memory_space<smem>>, %arg2: memref<1xi32, #tpu.memory_space<smem>>, %arg3: memref<128x128xf32, #tpu.memory_space<vmem>>, %arg4: memref<128x128xf32, #tpu.memory_space<vmem>>, %arg5: memref<128x1xf32, #tpu.memory_space<vmem>>, %arg6: memref<1x128xf32, #tpu.memory_space<vmem>>, %arg7: memref<128x1xi32, #tpu.memory_space<vmem>>, %arg8: memref<1x128xi32, #tpu.memory_space<vmem>>, %arg9: memref<24x128xf32, #tpu.memory_space<vmem>>) attributes {dimension_semantics = [#tpu.dimension_semantics<arbitrary>], iteration_bounds = array<i64: 1>, scalar_prefetch = 2 : i64, scratch_operands = 0 : i64, tpu.core_type = #tpu.core_type<tc>, window_params = [{transform_indices = @transform_0, window_bounds = array<i64: 128, 128>}, {transform_indices = @transform_1, window_bounds = array<i64: 128, 128>}, {transform_indices = @transform_2, window_bounds = array<i64: 128, 1>}, {transform_indices = @transform_3, window_bounds = array<i64: 1, 128>}, {transform_indices = @transform_4, window_bounds = array<i64: 128, 1>}, {transform_indices = @transform_5, window_bounds = array<i64: 1, 128>}, {pipeline_mode = #tpu.pipeline_mode<synchronous>, transform_indices = @transform_6, window_bounds = array<i64: 24, 128>}]} {
    %0 = arith.index_cast %arg0 : i32 to index
    %1 = memref.load %arg1[%0] : memref<1xi32, #tpu.memory_space<smem>>
    %2 = arith.index_cast %arg0 : i32 to index
    %3 = memref.load %arg2[%2] : memref<1xi32, #tpu.memory_space<smem>>
    %c0_i32 = arith.constant 0 : i32
    %4 = arith.cmpi eq, %arg0, %c0_i32 : i32
    %5 = arith.extui %4 : i1 to i32
    %c0_i32_0 = arith.constant 0 : i32
    %6 = arith.cmpi ne, %5, %c0_i32_0 : i32
    scf.if %6 {
      %cst_19 = arith.constant 0.000000e+00 : f32
      %37 = vector.broadcast %cst_19 : f32 to vector<24x128xf32>
      %c0_20 = arith.constant 0 : index
      %c0_21 = arith.constant 0 : index
      %38 = vector.load %arg9[%c0_20, %c0_21] : memref<24x128xf32, #tpu.memory_space<vmem>>, vector<24x128xf32>
      tpu.vector_store %arg9[%c0_20, %c0_21], %37 {strides = array<i32>} : memref<24x128xf32, #tpu.memory_space<vmem>>, vector<24x128xf32>,
    } else {
    }
    %c0 = arith.constant 0 : index
    %c0_1 = arith.constant 0 : index
    %7 = vector.load %arg3[%c0, %c0_1] : memref<128x128xf32, #tpu.memory_space<vmem>>, vector<128x128xf32>
    %c0_2 = arith.constant 0 : index
    %c0_3 = arith.constant 0 : index
    %8 = vector.load %arg4[%c0_2, %c0_3] : memref<128x128xf32, #tpu.memory_space<vmem>>, vector<128x128xf32>
    %cst = arith.constant dense<0.000000e+00> : vector<128x128xf32>
    %9 = tpu.matmul %7, %8, %cst {dimension_numbers = #tpu.dot_dimension_numbers<[1], [1], [0], [0], [0, 0, 1, 0], [], []>} : vector<128x128xf32>, vector<128x128xf32>, vector<128x128xf32> -> vector<128x128xf32>
    %c0_4 = arith.constant 0 : index
    %c0_5 = arith.constant 0 : index
    %10 = vector.load %arg5[%c0_4, %c0_5] : memref<128x1xf32, #tpu.memory_space<vmem>>, vector<128x1xf32>
    %c0_6 = arith.constant 0 : index
    %c0_7 = arith.constant 0 : index
    %11 = vector.load %arg6[%c0_6, %c0_7] : memref<1x128xf32, #tpu.memory_space<vmem>>, vector<1x128xf32>
    %12 = vector.broadcast %10 : vector<128x1xf32> to vector<128x128xf32>
    %13 = vector.broadcast %11 : vector<1x128xf32> to vector<128x128xf32>
    %14 = arith.addf %12, %13 : vector<128x128xf32>
    %cst_8 = arith.constant 2.000000e+00 : f32
    %15 = vector.broadcast %cst_8 : f32 to vector<128x128xf32>
    %16 = arith.mulf %15, %9 : vector<128x128xf32>
    %17 = arith.subf %14, %16 : vector<128x128xf32>
    %cst_9 = arith.constant 0.000000e+00 : f32
    %18 = vector.broadcast %cst_9 : f32 to vector<128x128xf32>
    %19 = arith.maximumf %17, %18 : vector<128x128xf32>
    %cst_10 = arith.constant 1.000000e+00 : f32
    %20 = vector.broadcast %cst_10 : f32 to vector<128x128xf32>
    %21 = arith.subf %20, %19 : vector<128x128xf32>
    %cst_11 = arith.constant 0.000000e+00 : f32
    %22 = vector.broadcast %cst_11 : f32 to vector<128x128xf32>
    %23 = arith.maximumf %21, %22 : vector<128x128xf32>
    %c0_12 = arith.constant 0 : index
    %c0_13 = arith.constant 0 : index
    %24 = vector.load %arg7[%c0_12, %c0_13] : memref<128x1xi32, #tpu.memory_space<vmem>>, vector<128x1xi32>
    %c0_14 = arith.constant 0 : index
    %c0_15 = arith.constant 0 : index
    %25 = vector.load %arg8[%c0_14, %c0_15] : memref<1x128xi32, #tpu.memory_space<vmem>>, vector<1x128xi32>
    %26 = vector.broadcast %24 : vector<128x1xi32> to vector<128x128xi32>
    %27 = vector.broadcast %25 : vector<1x128xi32> to vector<128x128xi32>
    %28 = arith.cmpi eq, %26, %27 : vector<128x128xi32>
    %29 = arith.cmpi ne, %1, %3 : i32
    %c0_i32_16 = arith.constant 0 : i32
    %30 = arith.cmpi ne, %3, %c0_i32_16 : i32
    %31 = arith.andi %29, %30 : i1
    %32 = arith.extui %31 : i1 to i32
    %c0_i32_17 = arith.constant 0 : i32
    %33 = arith.cmpi ne, %32, %c0_i32_17 : i32
    scf.if %33 {
      %cst_19 = arith.constant 0.000000e+00 : f32
      %37 = vector.broadcast %cst_19 : f32 to vector<128x128xf32>
      %38 = arith.select %28, %19, %37 : vector<128x128xi1>, vector<128x128xf32>
      %cst_20 = arith.constant 0.000000e+00 : f32
      %39 = vector.broadcast %cst_20 : f32 to vector<128x128xf32>
      %40 = arith.select %28, %39, %23 : vector<128x128xi1>, vector<128x128xf32>
      %41 = arith.extui %28 : vector<128x128xi1> to vector<128x128xi32>
      %42 = arith.sitofp %41 : vector<128x128xi32> to vector<128x128xf32>
      %c0_21 = arith.constant 0 : index
      %c0_22 = arith.constant 0 : index
      %43 = vector.load %arg9[%c0_21, %c0_22] : memref<24x128xf32, #tpu.memory_space<vmem>>, vector<8x128xf32>
      %44 = vector.extract_strided_slice %38 {offsets = [0, 0], sizes = [8, 128], strides = [1, 1]} : vector<128x128xf32> to vector<8x128xf32>
      %45 = vector.extract_strided_slice %38 {offsets = [8, 0], sizes = [8, 128], strides = [1, 1]} : vector<128x128xf32> to vector<8x128xf32>
      %46 = arith.addf %44, %45 : vector<8x128xf32>
      %47 = vector.extract_strided_slice %38 {offsets = [16, 0], sizes = [8, 128], strides = [1, 1]} : vector<128x128xf32> to vector<8x128xf32>
      %48 = arith.addf %46, %47 : vector<8x128xf32>
      %49 = vector.extract_strided_slice %38 {offsets = [24, 0], sizes = [8, 128], strides = [1, 1]} : vector<128x128xf32> to vector<8x128xf32>
      %50 = arith.addf %48, %49 : vector<8x128xf32>
      %51 = vector.extract_strided_slice %38 {offsets = [32, 0], sizes = [8, 128], strides = [1, 1]} : vector<128x128xf32> to vector<8x128xf32>
      %52 = arith.addf %50, %51 : vector<8x128xf32>
      %53 = vector.extract_strided_slice %38 {offsets = [40, 0], sizes = [8, 128], strides = [1, 1]} : vector<128x128xf32> to vector<8x128xf32>
      %54 = arith.addf %52, %53 : vector<8x128xf32>
      %55 = vector.extract_strided_slice %38 {offsets = [48, 0], sizes = [8, 128], strides = [1, 1]} : vector<128x128xf32> to vector<8x128xf32>
      %56 = arith.addf %54, %55 : vector<8x128xf32>
      %57 = vector.extract_strided_slice %38 {offsets = [56, 0], sizes = [8, 128], strides = [1, 1]} : vector<128x128xf32> to vector<8x128xf32>
      %58 = arith.addf %56, %57 : vector<8x128xf32>
      %59 = vector.extract_strided_slice %38 {offsets = [64, 0], sizes = [8, 128], strides = [1, 1]} : vector<128x128xf32> to vector<8x128xf32>
      %60 = arith.addf %58, %59 : vector<8x128xf32>
      %61 = vector.extract_strided_slice %38 {offsets = [72, 0], sizes = [8, 128], strides = [1, 1]} : vector<128x128xf32> to vector<8x128xf32>
      %62 = arith.addf %60, %61 : vector<8x128xf32>
      %63 = vector.extract_strided_slice %38 {offsets = [80, 0], sizes = [8, 128], strides = [1, 1]} : vector<128x128xf32> to vector<8x128xf32>
      %64 = arith.addf %62, %63 : vector<8x128xf32>
      %65 = vector.extract_strided_slice %38 {offsets = [88, 0], sizes = [8, 128], strides = [1, 1]} : vector<128x128xf32> to vector<8x128xf32>
      %66 = arith.addf %64, %65 : vector<8x128xf32>
      %67 = vector.extract_strided_slice %38 {offsets = [96, 0], sizes = [8, 128], strides = [1, 1]} : vector<128x128xf32> to vector<8x128xf32>
      %68 = arith.addf %66, %67 : vector<8x128xf32>
      %69 = vector.extract_strided_slice %38 {offsets = [104, 0], sizes = [8, 128], strides = [1, 1]} : vector<128x128xf32> to vector<8x128xf32>
      %70 = arith.addf %68, %69 : vector<8x128xf32>
      %71 = vector.extract_strided_slice %38 {offsets = [112, 0], sizes = [8, 128], strides = [1, 1]} : vector<128x128xf32> to vector<8x128xf32>
      %72 = arith.addf %70, %71 : vector<8x128xf32>
      %73 = vector.extract_strided_slice %38 {offsets = [120, 0], sizes = [8, 128], strides = [1, 1]} : vector<128x128xf32> to vector<8x128xf32>
      %74 = arith.addf %72, %73 : vector<8x128xf32>
      %75 = arith.addf %43, %74 : vector<8x128xf32>
      %c0_23 = arith.constant 0 : index
      %c0_24 = arith.constant 0 : index
      %76 = vector.load %arg9[%c0_23, %c0_24] : memref<24x128xf32, #tpu.memory_space<vmem>>, vector<8x128xf32>
      tpu.vector_store %arg9[%c0_23, %c0_24], %75 {strides = array<i32>} : memref<24x128xf32, #tpu.memory_space<vmem>>, vector<8x128xf32>,
      %c8 = arith.constant 8 : index
      %c0_25 = arith.constant 0 : index
      %77 = vector.load %arg9[%c8, %c0_25] : memref<24x128xf32, #tpu.memory_space<vmem>>, vector<8x128xf32>
      %78 = vector.extract_strided_slice %40 {offsets = [0, 0], sizes = [8, 128], strides = [1, 1]} : vector<128x128xf32> to vector<8x128xf32>
      %79 = vector.extract_strided_slice %40 {offsets = [8, 0], sizes = [8, 128], strides = [1, 1]} : vector<128x128xf32> to vector<8x128xf32>
      %80 = arith.addf %78, %79 : vector<8x128xf32>
      %81 = vector.extract_strided_slice %40 {offsets = [16, 0], sizes = [8, 128], strides = [1, 1]} : vector<128x128xf32> to vector<8x128xf32>
      %82 = arith.addf %80, %81 : vector<8x128xf32>
      %83 = vector.extract_strided_slice %40 {offsets = [24, 0], sizes = [8, 128], strides = [1, 1]} : vector<128x128xf32> to vector<8x128xf32>
      %84 = arith.addf %82, %83 : vector<8x128xf32>
      %85 = vector.extract_strided_slice %40 {offsets = [32, 0], sizes = [8, 128], strides = [1, 1]} : vector<128x128xf32> to vector<8x128xf32>
      %86 = arith.addf %84, %85 : vector<8x128xf32>
      %87 = vector.extract_strided_slice %40 {offsets = [40, 0], sizes = [8, 128], strides = [1, 1]} : vector<128x128xf32> to vector<8x128xf32>
      %88 = arith.addf %86, %87 : vector<8x128xf32>
      %89 = vector.extract_strided_slice %40 {offsets = [48, 0], sizes = [8, 128], strides = [1, 1]} : vector<128x128xf32> to vector<8x128xf32>
      %90 = arith.addf %88, %89 : vector<8x128xf32>
      %91 = vector.extract_strided_slice %40 {offsets = [56, 0], sizes = [8, 128], strides = [1, 1]} : vector<128x128xf32> to vector<8x128xf32>
      %92 = arith.addf %90, %91 : vector<8x128xf32>
      %93 = vector.extract_strided_slice %40 {offsets = [64, 0], sizes = [8, 128], strides = [1, 1]} : vector<128x128xf32> to vector<8x128xf32>
      %94 = arith.addf %92, %93 : vector<8x128xf32>
      %95 = vector.extract_strided_slice %40 {offsets = [72, 0], sizes = [8, 128], strides = [1, 1]} : vector<128x128xf32> to vector<8x128xf32>
      %96 = arith.addf %94, %95 : vector<8x128xf32>
      %97 = vector.extract_strided_slice %40 {offsets = [80, 0], sizes = [8, 128], strides = [1, 1]} : vector<128x128xf32> to vector<8x128xf32>
      %98 = arith.addf %96, %97 : vector<8x128xf32>
      %99 = vector.extract_strided_slice %40 {offsets = [88, 0], sizes = [8, 128], strides = [1, 1]} : vector<128x128xf32> to vector<8x128xf32>
      %100 = arith.addf %98, %99 : vector<8x128xf32>
      %101 = vector.extract_strided_slice %40 {offsets = [96, 0], sizes = [8, 128], strides = [1, 1]} : vector<128x128xf32> to vector<8x128xf32>
      %102 = arith.addf %100, %101 : vector<8x128xf32>
      %103 = vector.extract_strided_slice %40 {offsets = [104, 0], sizes = [8, 128], strides = [1, 1]} : vector<128x128xf32> to vector<8x128xf32>
      %104 = arith.addf %102, %103 : vector<8x128xf32>
      %105 = vector.extract_strided_slice %40 {offsets = [112, 0], sizes = [8, 128], strides = [1, 1]} : vector<128x128xf32> to vector<8x128xf32>
      %106 = arith.addf %104, %105 : vector<8x128xf32>
      %107 = vector.extract_strided_slice %40 {offsets = [120, 0], sizes = [8, 128], strides = [1, 1]} : vector<128x128xf32> to vector<8x128xf32>
      %108 = arith.addf %106, %107 : vector<8x128xf32>
      %109 = arith.addf %77, %108 : vector<8x128xf32>
      %c8_26 = arith.constant 8 : index
      %c0_27 = arith.constant 0 : index
      %110 = vector.load %arg9[%c8_26, %c0_27] : memref<24x128xf32, #tpu.memory_space<vmem>>, vector<8x128xf32>
      tpu.vector_store %arg9[%c8_26, %c0_27], %109 {strides = array<i32>} : memref<24x128xf32, #tpu.memory_space<vmem>>, vector<8x128xf32>,
      %c16 = arith.constant 16 : index
      %c0_28 = arith.constant 0 : index
      %111 = vector.load %arg9[%c16, %c0_28] : memref<24x128xf32, #tpu.memory_space<vmem>>, vector<8x128xf32>
      %112 = vector.extract_strided_slice %42 {offsets = [0, 0], sizes = [8, 128], strides = [1, 1]} : vector<128x128xf32> to vector<8x128xf32>
      %113 = vector.extract_strided_slice %42 {offsets = [8, 0], sizes = [8, 128], strides = [1, 1]} : vector<128x128xf32> to vector<8x128xf32>
      %114 = arith.addf %112, %113 : vector<8x128xf32>
      %115 = vector.extract_strided_slice %42 {offsets = [16, 0], sizes = [8, 128], strides = [1, 1]} : vector<128x128xf32> to vector<8x128xf32>
      %116 = arith.addf %114, %115 : vector<8x128xf32>
      %117 = vector.extract_strided_slice %42 {offsets = [24, 0], sizes = [8, 128], strides = [1, 1]} : vector<128x128xf32> to vector<8x128xf32>
      %118 = arith.addf %116, %117 : vector<8x128xf32>
      %119 = vector.extract_strided_slice %42 {offsets = [32, 0], sizes = [8, 128], strides = [1, 1]} : vector<128x128xf32> to vector<8x128xf32>
      %120 = arith.addf %118, %119 : vector<8x128xf32>
      %121 = vector.extract_strided_slice %42 {offsets = [40, 0], sizes = [8, 128], strides = [1, 1]} : vector<128x128xf32> to vector<8x128xf32>
      %122 = arith.addf %120, %121 : vector<8x128xf32>
      %123 = vector.extract_strided_slice %42 {offsets = [48, 0], sizes = [8, 128], strides = [1, 1]} : vector<128x128xf32> to vector<8x128xf32>
      %124 = arith.addf %122, %123 : vector<8x128xf32>
      %125 = vector.extract_strided_slice %42 {offsets = [56, 0], sizes = [8, 128], strides = [1, 1]} : vector<128x128xf32> to vector<8x128xf32>
      %126 = arith.addf %124, %125 : vector<8x128xf32>
      %127 = vector.extract_strided_slice %42 {offsets = [64, 0], sizes = [8, 128], strides = [1, 1]} : vector<128x128xf32> to vector<8x128xf32>
      %128 = arith.addf %126, %127 : vector<8x128xf32>
      %129 = vector.extract_strided_slice %42 {offsets = [72, 0], sizes = [8, 128], strides = [1, 1]} : vector<128x128xf32> to vector<8x128xf32>
      %130 = arith.addf %128, %129 : vector<8x128xf32>
      %131 = vector.extract_strided_slice %42 {offsets = [80, 0], sizes = [8, 128], strides = [1, 1]} : vector<128x128xf32> to vector<8x128xf32>
      %132 = arith.addf %130, %131 : vector<8x128xf32>
      %133 = vector.extract_strided_slice %42 {offsets = [88, 0], sizes = [8, 128], strides = [1, 1]} : vector<128x128xf32> to vector<8x128xf32>
      %134 = arith.addf %132, %133 : vector<8x128xf32>
      %135 = vector.extract_strided_slice %42 {offsets = [96, 0], sizes = [8, 128], strides = [1, 1]} : vector<128x128xf32> to vector<8x128xf32>
      %136 = arith.addf %134, %135 : vector<8x128xf32>
      %137 = vector.extract_strided_slice %42 {offsets = [104, 0], sizes = [8, 128], strides = [1, 1]} : vector<128x128xf32> to vector<8x128xf32>
      %138 = arith.addf %136, %137 : vector<8x128xf32>
      %139 = vector.extract_strided_slice %42 {offsets = [112, 0], sizes = [8, 128], strides = [1, 1]} : vector<128x128xf32> to vector<8x128xf32>
      %140 = arith.addf %138, %139 : vector<8x128xf32>
      %141 = vector.extract_strided_slice %42 {offsets = [120, 0], sizes = [8, 128], strides = [1, 1]} : vector<128x128xf32> to vector<8x128xf32>
      %142 = arith.addf %140, %141 : vector<8x128xf32>
      %143 = arith.addf %111, %142 : vector<8x128xf32>
      %c16_29 = arith.constant 16 : index
      %c0_30 = arith.constant 0 : index
      %144 = vector.load %arg9[%c16_29, %c0_30] : memref<24x128xf32, #tpu.memory_space<vmem>>, vector<8x128xf32>
      tpu.vector_store %arg9[%c16_29, %c0_30], %143 {strides = array<i32>} : memref<24x128xf32, #tpu.memory_space<vmem>>, vector<8x128xf32>,
    } else {
    }
    %true = arith.constant true
    %34 = arith.xori %31, %true : i1
    %35 = arith.extui %34 : i1 to i32
    %c0_i32_18 = arith.constant 0 : i32
    %36 = arith.cmpi ne, %35, %c0_i32_18 : i32
    scf.if %36 {
      %c128_i32 = arith.constant 128 : i32
      %37 = arith.muli %1, %c128_i32 : i32
      %38 = tpu.iota {dimensions = array<i32: 0>} : vector<128x128xi32>
      %39 = vector.broadcast %37 : i32 to vector<128x128xi32>
      %40 = arith.addi %39, %38 : vector<128x128xi32>
      %c128_i32_19 = arith.constant 128 : i32
      %41 = arith.muli %3, %c128_i32_19 : i32
      %42 = tpu.iota {dimensions = array<i32: 1>} : vector<128x128xi32>
      %43 = vector.broadcast %41 : i32 to vector<128x128xi32>
      %44 = arith.addi %43, %42 : vector<128x128xi32>
      %45 = arith.cmpi slt, %40, %44 : vector<128x128xi32>
      %c8_i32 = arith.constant 8 : i32
      %46 = vector.broadcast %c8_i32 : i32 to vector<128x128xi32>
      %47 = arith.cmpi slt, %44, %46 : vector<128x128xi32>
      %48 = arith.andi %45, %47 : vector<128x128xi1>
      %49 = arith.andi %28, %48 : vector<128x128xi1>
      %cst_20 = arith.constant dense<true> : vector<128x128xi1>
      %50 = arith.xori %28, %cst_20 : vector<128x128xi1>
      %51 = arith.andi %50, %48 : vector<128x128xi1>
      %cst_21 = arith.constant 0.000000e+00 : f32
      %52 = vector.broadcast %cst_21 : f32 to vector<128x128xf32>
      %53 = arith.select %49, %19, %52 : vector<128x128xi1>, vector<128x128xf32>
      %cst_22 = arith.constant 0.000000e+00 : f32
      %54 = vector.broadcast %cst_22 : f32 to vector<128x128xf32>
      %55 = arith.select %51, %23, %54 : vector<128x128xi1>, vector<128x128xf32>
      %56 = arith.extui %49 : vector<128x128xi1> to vector<128x128xi32>
      %57 = arith.sitofp %56 : vector<128x128xi32> to vector<128x128xf32>
      %c0_23 = arith.constant 0 : index
      %c0_24 = arith.constant 0 : index
      %58 = vector.load %arg9[%c0_23, %c0_24] : memref<24x128xf32, #tpu.memory_space<vmem>>, vector<8x128xf32>
      %59 = vector.extract_strided_slice %53 {offsets = [0, 0], sizes = [8, 128], strides = [1, 1]} : vector<128x128xf32> to vector<8x128xf32>
      %60 = vector.extract_strided_slice %53 {offsets = [8, 0], sizes = [8, 128], strides = [1, 1]} : vector<128x128xf32> to vector<8x128xf32>
      %61 = arith.addf %59, %60 : vector<8x128xf32>
      %62 = vector.extract_strided_slice %53 {offsets = [16, 0], sizes = [8, 128], strides = [1, 1]} : vector<128x128xf32> to vector<8x128xf32>
      %63 = arith.addf %61, %62 : vector<8x128xf32>
      %64 = vector.extract_strided_slice %53 {offsets = [24, 0], sizes = [8, 128], strides = [1, 1]} : vector<128x128xf32> to vector<8x128xf32>
      %65 = arith.addf %63, %64 : vector<8x128xf32>
      %66 = vector.extract_strided_slice %53 {offsets = [32, 0], sizes = [8, 128], strides = [1, 1]} : vector<128x128xf32> to vector<8x128xf32>
      %67 = arith.addf %65, %66 : vector<8x128xf32>
      %68 = vector.extract_strided_slice %53 {offsets = [40, 0], sizes = [8, 128], strides = [1, 1]} : vector<128x128xf32> to vector<8x128xf32>
      %69 = arith.addf %67, %68 : vector<8x128xf32>
      %70 = vector.extract_strided_slice %53 {offsets = [48, 0], sizes = [8, 128], strides = [1, 1]} : vector<128x128xf32> to vector<8x128xf32>
      %71 = arith.addf %69, %70 : vector<8x128xf32>
      %72 = vector.extract_strided_slice %53 {offsets = [56, 0], sizes = [8, 128], strides = [1, 1]} : vector<128x128xf32> to vector<8x128xf32>
      %73 = arith.addf %71, %72 : vector<8x128xf32>
      %74 = vector.extract_strided_slice %53 {offsets = [64, 0], sizes = [8, 128], strides = [1, 1]} : vector<128x128xf32> to vector<8x128xf32>
      %75 = arith.addf %73, %74 : vector<8x128xf32>
      %76 = vector.extract_strided_slice %53 {offsets = [72, 0], sizes = [8, 128], strides = [1, 1]} : vector<128x128xf32> to vector<8x128xf32>
      %77 = arith.addf %75, %76 : vector<8x128xf32>
      %78 = vector.extract_strided_slice %53 {offsets = [80, 0], sizes = [8, 128], strides = [1, 1]} : vector<128x128xf32> to vector<8x128xf32>
      %79 = arith.addf %77, %78 : vector<8x128xf32>
      %80 = vector.extract_strided_slice %53 {offsets = [88, 0], sizes = [8, 128], strides = [1, 1]} : vector<128x128xf32> to vector<8x128xf32>
      %81 = arith.addf %79, %80 : vector<8x128xf32>
      %82 = vector.extract_strided_slice %53 {offsets = [96, 0], sizes = [8, 128], strides = [1, 1]} : vector<128x128xf32> to vector<8x128xf32>
      %83 = arith.addf %81, %82 : vector<8x128xf32>
      %84 = vector.extract_strided_slice %53 {offsets = [104, 0], sizes = [8, 128], strides = [1, 1]} : vector<128x128xf32> to vector<8x128xf32>
      %85 = arith.addf %83, %84 : vector<8x128xf32>
      %86 = vector.extract_strided_slice %53 {offsets = [112, 0], sizes = [8, 128], strides = [1, 1]} : vector<128x128xf32> to vector<8x128xf32>
      %87 = arith.addf %85, %86 : vector<8x128xf32>
      %88 = vector.extract_strided_slice %53 {offsets = [120, 0], sizes = [8, 128], strides = [1, 1]} : vector<128x128xf32> to vector<8x128xf32>
      %89 = arith.addf %87, %88 : vector<8x128xf32>
      %90 = arith.addf %58, %89 : vector<8x128xf32>
      %c0_25 = arith.constant 0 : index
      %c0_26 = arith.constant 0 : index
      %91 = vector.load %arg9[%c0_25, %c0_26] : memref<24x128xf32, #tpu.memory_space<vmem>>, vector<8x128xf32>
      tpu.vector_store %arg9[%c0_25, %c0_26], %90 {strides = array<i32>} : memref<24x128xf32, #tpu.memory_space<vmem>>, vector<8x128xf32>,
      %c8 = arith.constant 8 : index
      %c0_27 = arith.constant 0 : index
      %92 = vector.load %arg9[%c8, %c0_27] : memref<24x128xf32, #tpu.memory_space<vmem>>, vector<8x128xf32>
      %93 = vector.extract_strided_slice %55 {offsets = [0, 0], sizes = [8, 128], strides = [1, 1]} : vector<128x128xf32> to vector<8x128xf32>
      %94 = vector.extract_strided_slice %55 {offsets = [8, 0], sizes = [8, 128], strides = [1, 1]} : vector<128x128xf32> to vector<8x128xf32>
      %95 = arith.addf %93, %94 : vector<8x128xf32>
      %96 = vector.extract_strided_slice %55 {offsets = [16, 0], sizes = [8, 128], strides = [1, 1]} : vector<128x128xf32> to vector<8x128xf32>
      %97 = arith.addf %95, %96 : vector<8x128xf32>
      %98 = vector.extract_strided_slice %55 {offsets = [24, 0], sizes = [8, 128], strides = [1, 1]} : vector<128x128xf32> to vector<8x128xf32>
      %99 = arith.addf %97, %98 : vector<8x128xf32>
      %100 = vector.extract_strided_slice %55 {offsets = [32, 0], sizes = [8, 128], strides = [1, 1]} : vector<128x128xf32> to vector<8x128xf32>
      %101 = arith.addf %99, %100 : vector<8x128xf32>
      %102 = vector.extract_strided_slice %55 {offsets = [40, 0], sizes = [8, 128], strides = [1, 1]} : vector<128x128xf32> to vector<8x128xf32>
      %103 = arith.addf %101, %102 : vector<8x128xf32>
      %104 = vector.extract_strided_slice %55 {offsets = [48, 0], sizes = [8, 128], strides = [1, 1]} : vector<128x128xf32> to vector<8x128xf32>
      %105 = arith.addf %103, %104 : vector<8x128xf32>
      %106 = vector.extract_strided_slice %55 {offsets = [56, 0], sizes = [8, 128], strides = [1, 1]} : vector<128x128xf32> to vector<8x128xf32>
      %107 = arith.addf %105, %106 : vector<8x128xf32>
      %108 = vector.extract_strided_slice %55 {offsets = [64, 0], sizes = [8, 128], strides = [1, 1]} : vector<128x128xf32> to vector<8x128xf32>
      %109 = arith.addf %107, %108 : vector<8x128xf32>
      %110 = vector.extract_strided_slice %55 {offsets = [72, 0], sizes = [8, 128], strides = [1, 1]} : vector<128x128xf32> to vector<8x128xf32>
      %111 = arith.addf %109, %110 : vector<8x128xf32>
      %112 = vector.extract_strided_slice %55 {offsets = [80, 0], sizes = [8, 128], strides = [1, 1]} : vector<128x128xf32> to vector<8x128xf32>
      %113 = arith.addf %111, %112 : vector<8x128xf32>
      %114 = vector.extract_strided_slice %55 {offsets = [88, 0], sizes = [8, 128], strides = [1, 1]} : vector<128x128xf32> to vector<8x128xf32>
      %115 = arith.addf %113, %114 : vector<8x128xf32>
      %116 = vector.extract_strided_slice %55 {offsets = [96, 0], sizes = [8, 128], strides = [1, 1]} : vector<128x128xf32> to vector<8x128xf32>
      %117 = arith.addf %115, %116 : vector<8x128xf32>
      %118 = vector.extract_strided_slice %55 {offsets = [104, 0], sizes = [8, 128], strides = [1, 1]} : vector<128x128xf32> to vector<8x128xf32>
      %119 = arith.addf %117, %118 : vector<8x128xf32>
      %120 = vector.extract_strided_slice %55 {offsets = [112, 0], sizes = [8, 128], strides = [1, 1]} : vector<128x128xf32> to vector<8x128xf32>
      %121 = arith.addf %119, %120 : vector<8x128xf32>
      %122 = vector.extract_strided_slice %55 {offsets = [120, 0], sizes = [8, 128], strides = [1, 1]} : vector<128x128xf32> to vector<8x128xf32>
      %123 = arith.addf %121, %122 : vector<8x128xf32>
      %124 = arith.addf %92, %123 : vector<8x128xf32>
      %c8_28 = arith.constant 8 : index
      %c0_29 = arith.constant 0 : index
      %125 = vector.load %arg9[%c8_28, %c0_29] : memref<24x128xf32, #tpu.memory_space<vmem>>, vector<8x128xf32>
      tpu.vector_store %arg9[%c8_28, %c0_29], %124 {strides = array<i32>} : memref<24x128xf32, #tpu.memory_space<vmem>>, vector<8x128xf32>,
      %c16 = arith.constant 16 : index
      %c0_30 = arith.constant 0 : index
      %126 = vector.load %arg9[%c16, %c0_30] : memref<24x128xf32, #tpu.memory_space<vmem>>, vector<8x128xf32>
      %127 = vector.extract_strided_slice %57 {offsets = [0, 0], sizes = [8, 128], strides = [1, 1]} : vector<128x128xf32> to vector<8x128xf32>
      %128 = vector.extract_strided_slice %57 {offsets = [8, 0], sizes = [8, 128], strides = [1, 1]} : vector<128x128xf32> to vector<8x128xf32>
      %129 = arith.addf %127, %128 : vector<8x128xf32>
      %130 = vector.extract_strided_slice %57 {offsets = [16, 0], sizes = [8, 128], strides = [1, 1]} : vector<128x128xf32> to vector<8x128xf32>
      %131 = arith.addf %129, %130 : vector<8x128xf32>
      %132 = vector.extract_strided_slice %57 {offsets = [24, 0], sizes = [8, 128], strides = [1, 1]} : vector<128x128xf32> to vector<8x128xf32>
      %133 = arith.addf %131, %132 : vector<8x128xf32>
      %134 = vector.extract_strided_slice %57 {offsets = [32, 0], sizes = [8, 128], strides = [1, 1]} : vector<128x128xf32> to vector<8x128xf32>
      %135 = arith.addf %133, %134 : vector<8x128xf32>
      %136 = vector.extract_strided_slice %57 {offsets = [40, 0], sizes = [8, 128], strides = [1, 1]} : vector<128x128xf32> to vector<8x128xf32>
      %137 = arith.addf %135, %136 : vector<8x128xf32>
      %138 = vector.extract_strided_slice %57 {offsets = [48, 0], sizes = [8, 128], strides = [1, 1]} : vector<128x128xf32> to vector<8x128xf32>
      %139 = arith.addf %137, %138 : vector<8x128xf32>
      %140 = vector.extract_strided_slice %57 {offsets = [56, 0], sizes = [8, 128], strides = [1, 1]} : vector<128x128xf32> to vector<8x128xf32>
      %141 = arith.addf %139, %140 : vector<8x128xf32>
      %142 = vector.extract_strided_slice %57 {offsets = [64, 0], sizes = [8, 128], strides = [1, 1]} : vector<128x128xf32> to vector<8x128xf32>
      %143 = arith.addf %141, %142 : vector<8x128xf32>
      %144 = vector.extract_strided_slice %57 {offsets = [72, 0], sizes = [8, 128], strides = [1, 1]} : vector<128x128xf32> to vector<8x128xf32>
      %145 = arith.addf %143, %144 : vector<8x128xf32>
      %146 = vector.extract_strided_slice %57 {offsets = [80, 0], sizes = [8, 128], strides = [1, 1]} : vector<128x128xf32> to vector<8x128xf32>
      %147 = arith.addf %145, %146 : vector<8x128xf32>
      %148 = vector.extract_strided_slice %57 {offsets = [88, 0], sizes = [8, 128], strides = [1, 1]} : vector<128x128xf32> to vector<8x128xf32>
      %149 = arith.addf %147, %148 : vector<8x128xf32>
      %150 = vector.extract_strided_slice %57 {offsets = [96, 0], sizes = [8, 128], strides = [1, 1]} : vector<128x128xf32> to vector<8x128xf32>
      %151 = arith.addf %149, %150 : vector<8x128xf32>
      %152 = vector.extract_strided_slice %57 {offsets = [104, 0], sizes = [8, 128], strides = [1, 1]} : vector<128x128xf32> to vector<8x128xf32>
      %153 = arith.addf %151, %152 : vector<8x128xf32>
      %154 = vector.extract_strided_slice %57 {offsets = [112, 0], sizes = [8, 128], strides = [1, 1]} : vector<128x128xf32> to vector<8x128xf32>
      %155 = arith.addf %153, %154 : vector<8x128xf32>
      %156 = vector.extract_strided_slice %57 {offsets = [120, 0], sizes = [8, 128], strides = [1, 1]} : vector<128x128xf32> to vector<8x128xf32>
      %157 = arith.addf %155, %156 : vector<8x128xf32>
      %158 = arith.addf %126, %157 : vector<8x128xf32>
      %c16_31 = arith.constant 16 : index
      %c0_32 = arith.constant 0 : index
      %159 = vector.load %arg9[%c16_31, %c0_32] : memref<24x128xf32, #tpu.memory_space<vmem>>, vector<8x128xf32>
      tpu.vector_store %arg9[%c16_31, %c0_32], %158 {strides = array<i32>} : memref<24x128xf32, #tpu.memory_space<vmem>>, vector<8x128xf32>,
    } else {
    }
    return
  }
  func.func @transform_0(%arg0: i32, %arg1: memref<1xi32, #tpu.memory_space<smem>>, %arg2: memref<1xi32, #tpu.memory_space<smem>>) -> (i32, i32) {
    %0 = arith.index_cast %arg0 : i32 to index
    %1 = memref.load %arg1[%0] : memref<1xi32, #tpu.memory_space<smem>>
    %c0_i32 = arith.constant 0 : i32
    %c0_i32_0 = arith.constant 0 : i32
    return %1, %c0_i32 : i32, i32
  }
  func.func @transform_1(%arg0: i32, %arg1: memref<1xi32, #tpu.memory_space<smem>>, %arg2: memref<1xi32, #tpu.memory_space<smem>>) -> (i32, i32) {
    %0 = arith.index_cast %arg0 : i32 to index
    %1 = memref.load %arg2[%0] : memref<1xi32, #tpu.memory_space<smem>>
    %c0_i32 = arith.constant 0 : i32
    %c0_i32_0 = arith.constant 0 : i32
    return %1, %c0_i32 : i32, i32
  }
  func.func @transform_2(%arg0: i32, %arg1: memref<1xi32, #tpu.memory_space<smem>>, %arg2: memref<1xi32, #tpu.memory_space<smem>>) -> (i32, i32) {
    %0 = arith.index_cast %arg0 : i32 to index
    %1 = memref.load %arg1[%0] : memref<1xi32, #tpu.memory_space<smem>>
    %c0_i32 = arith.constant 0 : i32
    %c0_i32_0 = arith.constant 0 : i32
    return %1, %c0_i32 : i32, i32
  }
  func.func @transform_3(%arg0: i32, %arg1: memref<1xi32, #tpu.memory_space<smem>>, %arg2: memref<1xi32, #tpu.memory_space<smem>>) -> (i32, i32) {
    %0 = arith.index_cast %arg0 : i32 to index
    %1 = memref.load %arg2[%0] : memref<1xi32, #tpu.memory_space<smem>>
    %c0_i32 = arith.constant 0 : i32
    %c0_i32_0 = arith.constant 0 : i32
    return %c0_i32, %1 : i32, i32
  }
  func.func @transform_4(%arg0: i32, %arg1: memref<1xi32, #tpu.memory_space<smem>>, %arg2: memref<1xi32, #tpu.memory_space<smem>>) -> (i32, i32) {
    %0 = arith.index_cast %arg0 : i32 to index
    %1 = memref.load %arg1[%0] : memref<1xi32, #tpu.memory_space<smem>>
    %c0_i32 = arith.constant 0 : i32
    %c0_i32_0 = arith.constant 0 : i32
    return %1, %c0_i32 : i32, i32
  }
  func.func @transform_5(%arg0: i32, %arg1: memref<1xi32, #tpu.memory_space<smem>>, %arg2: memref<1xi32, #tpu.memory_space<smem>>) -> (i32, i32) {
    %0 = arith.index_cast %arg0 : i32 to index
    %1 = memref.load %arg2[%0] : memref<1xi32, #tpu.memory_space<smem>>
    %c0_i32 = arith.constant 0 : i32
    %c0_i32_0 = arith.constant 0 : i32
    return %c0_i32, %1 : i32, i32
  }
  func.func @transform_6(%arg0: i32, %arg1: memref<1xi32, #tpu.memory_space<smem>>, %arg2: memref<1xi32, #tpu.memory_space<smem>>) -> (i32, i32) {
    %c0_i32 = arith.constant 0 : i32
    %c0_i32_0 = arith.constant 0 : i32
    %c0_i32_1 = arith.constant 0 : i32
    return %c0_i32, %c0_i32_0 : i32, i32
  }
}

</mosaic_0001>

<bundles_post_ra>
// kernel: tpu_custom_call.1
= control target key start
LH: loop header
LB: loop body
LE: loop exit
PB: predicated region body
PF: predicated region fallthrough
CT: control target
= control target key end

     0   :  { %15 = vsyncpa [#allocation6], 0  ;;  %v1071_v0 = vmov 0   ;;  %v1072_v1 = vmov 0.0   ;;  %s2070_s0 = inlined_call_operand.<no memory space> [shape: s32[1], index: 0, kind: input, shape index: {}]   ;;  %s2071_s1 = inlined_call_operand.<no memory space> [shape: s32[1], index: 1, kind: input, shape index: {}]   ;;  %s2072_s2 = inlined_call_operand.vmem [shape: f32[128,128], index: 2, kind: input, shape index: {}]   ;;  %s2073_s3 = inlined_call_operand.vmem [shape: f32[128,128], index: 3, kind: input, shape index: {}]   ;;  %s2074_s4 = inlined_call_operand.vmem [shape: f32[128,1], index: 4, kind: input, shape index: {}]   ;;  %s2075_s5 = inlined_call_operand.vmem [shape: f32[1,128], index: 5, kind: input, shape index: {}]   ;;  %s2076_s6 = inlined_call_operand.vmem [shape: s32[128,1], index: 6, kind: input, shape index: {}]   ;;  %s2077_s7 = inlined_call_operand.vmem [shape: s32[1,128], index: 7, kind: input, shape index: {}]   ;;  %s2078_s8 = inlined_call_operand.hbm [shape: f32[24,128], index: 8, kind: output, shape index: {}]  }
   0x1   :  { %s944_s29 = sshll.u32 %s2071_s1, 4  ;;  %s942_s10 = sshll.u32 %s2070_s0, 4  ;;  %1042 = vset.pattern.permute.xlu2 %v1071_v0  ;;  %1041 = vset.pattern.permute.xlu1 %v1071_v0  ;;  %150 = vst [vmem:[#allocation5] sm:$0xff] %v1072_v1 }
   0x2   :  { %p112_p0 = scmp.lt.s32.totalorder %s944_s29, 15  ;;  %p104_p1 = scmp.lt.s32.totalorder %s942_s10, 15  ;;  %1040 = vset.pattern.permute.xlu0 %v1071_v0  ;;  %151 = vst [vmem:[#allocation5 + $0x8] sm:$0xff] %v1072_v1 }
   0x3   :  { %152 = vst [vmem:[#allocation5 + $0x10] sm:$0xff] %v1072_v1  ;;  %p127_p2 = scmp.lt.s32.totalorder %s2071_s1, 0  ;;  %p528_p3 = scmp.ne.s32.totalorder %s2070_s0, %s2071_s1 }
   0x4   :  { %s2319_s29 = smov (!%p112_p0, %s944_s29), 15  ;;  %s2321_s10 = smov (!%p104_p1, %s942_s10), 15 }
   0x5   :  { %s945_s11 = sshll.u32 %s2319_s29, 3  ;;  %s1138_s17 = sshll.u32 %s2321_s10, 3 }
   0x6   :  { %s1136_s16 = scalar_lea.vmem %s2073_s3, %s945_s11  ;;  %s1145_s20 = scalar_lea.vmem %s2074_s4, %s1138_s17 }
   0x7   :  { %v184_v2 = vld [vmem:[%s1136_s16 + $0x78] sm:$0xff]  ;;  %v254_v3 = vld [vmem:[%s1145_s20 + $0x20] sm:$0xff]  ;;  %v252_v4 = vld [vmem:[%s1145_s20 + $0x10] sm:$0xff]  ;;  %s1158_s23 = scalar_select %p127_p2, %s2071_s1, 0 }
   0x8   :  { %185 = vmatpush.xpose.msra.mxu0 %v184_v2  ;;  %984 = vmatpush.xpose.msra.mxu1 %v184_v2  ;;  %v250_v5 = vld [vmem:[%s1145_s20] sm:$0xff]  ;;  %v183_v6 = vld [vmem:[%s1136_s16 + $0x70] sm:$0xff]  ;;  %v182_v7 = vld [vmem:[%s1136_s16 + $0x68] sm:$0xff]  ;;  %s1192_s10 = scalar_lea.vmem %s2076_s6, %s1138_s17  ;;  %s1213_s12 = scalar_lea.vmem %s2072_s2, %s1138_s17 }
   0x9   :  { %985 = vmatpush.xpose.msra.mxu2 %v184_v2  ;;  %986 = vmatpush.xpose.msra.mxu3 %v184_v2  ;;  %s129_s26 = scalar_lea.vmem %s2075_s5, %s1158_s23  ;;  %v255_v8 = vld [vmem:[%s1145_s20 + $0x28] sm:$0xff]  ;;  %v253_v9 = vld [vmem:[%s1145_s20 + $0x18] sm:$0xff]  ;;  %s142_s29 = scalar_lea.vmem %s2077_s7, %s1158_s23  ;;  %v181_v11 = vld [vmem:[%s1136_s16 + $0x60] sm:$0xff] }
   0xa   :  { %289 = vperm.xlu2 %1042, %v254_v3   ;;  %279 = vperm.xlu1 %1041, %v252_v4   ;;  %v251_v10 = vld [vmem:[%s1145_s20 + $0x8] sm:$0xff]  ;;  %v180_v12 = vld [vmem:[%s1136_s16 + $0x58] sm:$0xff]  ;;  %v258_v13 = vld [vmem:[%s1145_s20 + $0x40] sm:$0xff]  ;;  %p529_p4 = scmp.ne.s32.totalorder %s2071_s1, 0 }
   0xb   :  { %269 = vperm.xlu0 %1040, %v250_v5   ;;  %v257_v14 = vld [vmem:[%s1145_s20 + $0x38] sm:$0xff]  ;;  %v256_v15 = vld [vmem:[%s1145_s20 + $0x30] sm:$0xff]  ;;  %v178_v17 = vld [vmem:[%s1136_s16 + $0x48] sm:$0xff] }
   0xc   :  { %186 = vmatpush.xpose.msra.mxu0 %v183_v6  ;;  %987 = vmatpush.xpose.msra.mxu1 %v183_v6  ;;  %v179_v16 = vld [vmem:[%s1136_s16 + $0x50] sm:$0xff]  ;;  %v261_v18 = vld [vmem:[%s1145_s20 + $0x58] sm:$0xff]  ;;  %v259_v20 = vld [vmem:[%s1145_s20 + $0x48] sm:$0xff]  ;;  %p1258_p5 = pnand %p529_p4, %p528_p3 }
   0xd   :  { %988 = vmatpush.xpose.msra.mxu2 %v183_v6  ;;  %989 = vmatpush.xpose.msra.mxu3 %v183_v6  ;;  %v260_v19 = vld [vmem:[%s1145_s20 + $0x50] sm:$0xff]  ;;  %v177_v21 = vld [vmem:[%s1136_s16 + $0x40] sm:$0xff]  ;;  %v176_v22 = vld [vmem:[%s1136_s16 + $0x38] sm:$0xff] }
   0xe   :  { %v264_v23 = vld [vmem:[%s1145_s20 + $0x70] sm:$0xff]  ;;  %v263_v24 = vld [vmem:[%s1145_s20 + $0x68] sm:$0xff]  ;;  %v262_v25 = vld [vmem:[%s1145_s20 + $0x60] sm:$0xff] }
   0xf   :  { %v175_v26 = vld [vmem:[%s1136_s16 + $0x30] sm:$0xff]  ;;  %v174_v27 = vld [vmem:[%s1136_s16 + $0x28] sm:$0xff]  ;;  %v446_v29 = vld [vmem:[%s1192_s10] sm:$0xff] }
  0x10   :  { %187 = vmatpush.xpose.msra.mxu0 %v182_v7  ;;  %990 = vmatpush.xpose.msra.mxu1 %v182_v7  ;;  %v447_v28 = vld [vmem:[%s1192_s10 + $0x8] sm:$0xff]  ;;  %v265_v30 = vld [vmem:[%s1145_s20 + $0x78] sm:$0xff]  ;;  %v173_v31 = vld [vmem:[%s1136_s16 + $0x20] sm:$0xff] }
  0x11   :  { %991 = vmatpush.xpose.msra.mxu2 %v182_v7  ;;  %992 = vmatpush.xpose.msra.mxu3 %v182_v7  ;;  %v172_v32 = vld [vmem:[%s1136_s16 + $0x18] sm:$0xff]  ;;  %v450_v33 = vld [vmem:[%s1192_s10 + $0x20] sm:$0xff]  ;;  %v448_v35 = vld [vmem:[%s1192_s10 + $0x10] sm:$0xff] }
  0x12   :  { %294 = vperm.xlu2 %1042, %v255_v8   ;;  %284 = vperm.xlu1 %1041, %v253_v9   ;;  %v449_v34 = vld [vmem:[%s1192_s10 + $0x18] sm:$0xff]  ;;  %v171_v36 = vld [vmem:[%s1136_s16 + $0x10] sm:$0xff]  ;;  %v170_v37 = vld [vmem:[%s1136_s16 + $0x8] sm:$0xff] }
  0x13   :  { %274 = vperm.xlu0 %1040, %v251_v10   ;;  %v453_v38 = vld [vmem:[%s1192_s10 + $0x38] sm:$0xff]  ;;  %v452_v39 = vld [vmem:[%s1192_s10 + $0x30] sm:$0xff]  ;;  %v451_v40 = vld [vmem:[%s1192_s10 + $0x28] sm:$0xff] }
  0x14   :  { %188 = vmatpush.xpose.msra.mxu0 %v181_v11  ;;  %993 = vmatpush.xpose.msra.mxu1 %v181_v11  ;;  %v169_v41 = vld [vmem:[%s1136_s16] sm:$0xff]  ;;  %v456_v46 = vld [vmem:[%s1192_s10 + $0x50] sm:$0xff]  ;;  %v455_v47 = vld [vmem:[%s1192_s10 + $0x48] sm:$0xff] }
  0x15   :  { %994 = vmatpush.xpose.msra.mxu2 %v181_v11  ;;  %995 = vmatpush.xpose.msra.mxu3 %v181_v11  ;;  %v153_v42 = vld [vmem:[%s1213_s12] sm:$0xff]  ;;  %v154_v49 = vld [vmem:[%s1213_s12 + $0x8] sm:$0xff]  ;;  %v457_v55 = vld [vmem:[%s1192_s10 + $0x58] sm:$0xff] }
  0x16   :  { %v157_v43 = vld [vmem:[%s1213_s12 + $0x20] sm:$0xff]  ;;  %v158_v50 = vld [vmem:[%s1213_s12 + $0x28] sm:$0xff]  ;;  %v155_v56 = vld [vmem:[%s1213_s12 + $0x10] sm:$0xff] }
  0x17   :  { %v161_v44 = vld [vmem:[%s1213_s12 + $0x40] sm:$0xff]  ;;  %v162_v51 = vld [vmem:[%s1213_s12 + $0x48] sm:$0xff]  ;;  %v159_v57 = vld [vmem:[%s1213_s12 + $0x30] sm:$0xff] }
  0x18   :  { %189 = vmatpush.xpose.msra.mxu0 %v180_v12  ;;  %996 = vmatpush.xpose.msra.mxu1 %v180_v12  ;;  %v165_v45 = vld [vmem:[%s1213_s12 + $0x60] sm:$0xff]  ;;  %v166_v52 = vld [vmem:[%s1213_s12 + $0x68] sm:$0xff]  ;;  %v163_v58 = vld [vmem:[%s1213_s12 + $0x50] sm:$0xff] }
  0x19   :  { %997 = vmatpush.xpose.msra.mxu2 %v180_v12  ;;  %998 = vmatpush.xpose.msra.mxu3 %v180_v12  ;;  %v454_v48 = vld [vmem:[%s1192_s10 + $0x40] sm:$0xff]  ;;  %v459_v53 = vld [vmem:[%s1192_s10 + $0x68] sm:$0xff]  ;;  %v167_v59 = vld [vmem:[%s1213_s12 + $0x70] sm:$0xff] }
  0x1a   :  { %309 = vperm.xlu2 %1042, %v258_v13   ;;  %304 = vperm.xlu1 %1041, %v257_v14   ;;  %v458_v54 = vld [vmem:[%s1192_s10 + $0x60] sm:$0xff]  ;;  %v461_v60 = vld [vmem:[%s1192_s10 + $0x78] sm:$0xff]  ;;  %v460_v61 = vld [vmem:[%s1192_s10 + $0x70] sm:$0xff] }
  0x1b   :  { %299 = vperm.xlu0 %1040, %v256_v15   ;;  %v156_v62 = vld [vmem:[%s1213_s12 + $0x18] sm:$0xff]  ;;  %v1244_v2 = vld [vmem:[%s129_s26] ss:$0 sm:$0xff] }
  0x1c   :  { %190 = vmatpush.xpose.msra.mxu0 %v179_v16  ;;  %999 = vmatpush.xpose.msra.mxu1 %v179_v16  ;;  %v160_v63 = vld [vmem:[%s1213_s12 + $0x38] sm:$0xff] }
  0x1d   :  { %1000 = vmatpush.xpose.msra.mxu2 %v179_v16  ;;  %1001 = vmatpush.xpose.msra.mxu3 %v179_v16  ;;  %v164_v0 = vld [vmem:[%s1213_s12 + $0x58] sm:$0xff] }
  0x1e   :  { %v168_v1 = vld [vmem:[%s1213_s12 + $0x78] sm:$0xff] }
  0x20   :  { %191 = vmatpush.xpose.msra.mxu0 %v178_v17  ;;  %1002 = vmatpush.xpose.msra.mxu1 %v178_v17 }
  0x21   :  { %1003 = vmatpush.xpose.msra.mxu2 %v178_v17  ;;  %1004 = vmatpush.xpose.msra.mxu3 %v178_v17  ;;  %v1044_v17 = vld [vmem:[%s142_s29] ss:$0 sm:$0xff] }
  0x22   :  { %324 = vperm.xlu2 %1042, %v261_v18   ;;  %319 = vperm.xlu1 %1041, %v260_v19  }
  0x23   :  { %314 = vperm.xlu0 %1040, %v259_v20  }
  0x24   :  { %192 = vmatpush.xpose.msra.mxu0 %v177_v21  ;;  %1005 = vmatpush.xpose.msra.mxu1 %v177_v21 }
  0x25   :  { %1006 = vmatpush.xpose.msra.mxu2 %v177_v21  ;;  %1007 = vmatpush.xpose.msra.mxu3 %v177_v21 }
  0x28   :  { %193 = vmatpush.xpose.msra.mxu0 %v176_v22  ;;  %1008 = vmatpush.xpose.msra.mxu1 %v176_v22 }
  0x29   :  { %1009 = vmatpush.xpose.msra.mxu2 %v176_v22  ;;  %1010 = vmatpush.xpose.msra.mxu3 %v176_v22 }
  0x2a   :  { %339 = vperm.xlu2 %1042, %v264_v23   ;;  %334 = vperm.xlu1 %1041, %v263_v24   ;;  %v2143_v24 = vmov 0 }
  0x2b   :  { %329 = vperm.xlu0 %1040, %v262_v25  }
  0x2c   :  { %194 = vmatpush.xpose.msra.mxu0 %v175_v26  ;;  %1011 = vmatpush.xpose.msra.mxu1 %v175_v26 }
  0x2d   :  { %1012 = vmatpush.xpose.msra.mxu2 %v175_v26  ;;  %1013 = vmatpush.xpose.msra.mxu3 %v175_v26 }
  0x30   :  { %195 = vmatpush.xpose.msra.mxu0 %v174_v27  ;;  %1014 = vmatpush.xpose.msra.mxu1 %v174_v27 }
  0x31   :  { %1015 = vmatpush.xpose.msra.mxu2 %v174_v27  ;;  %1016 = vmatpush.xpose.msra.mxu3 %v174_v27 }
  0x32   :  { %467 = vperm.xlu2 %1042, %v447_v28   ;;  %464 = vperm.xlu1 %1041, %v446_v29   ;;  %v2145_v28 = vmov 0 }
  0x33   :  { %344 = vperm.xlu0 %1040, %v265_v30  }
  0x34   :  { %196 = vmatpush.xpose.msra.mxu0 %v173_v31  ;;  %1017 = vmatpush.xpose.msra.mxu1 %v173_v31 }
  0x35   :  { %1018 = vmatpush.xpose.msra.mxu2 %v173_v31  ;;  %1019 = vmatpush.xpose.msra.mxu3 %v173_v31 }
  0x38   :  { %197 = vmatpush.xpose.msra.mxu0 %v172_v32  ;;  %1020 = vmatpush.xpose.msra.mxu1 %v172_v32 }
  0x39   :  { %1021 = vmatpush.xpose.msra.mxu2 %v172_v32  ;;  %1022 = vmatpush.xpose.msra.mxu3 %v172_v32  ;;  %v2147_v32 = vmov 0 }
  0x3a   :  { %476 = vperm.xlu2 %1042, %v450_v33   ;;  %473 = vperm.xlu1 %1041, %v449_v34  }
  0x3b   :  { %470 = vperm.xlu0 %1040, %v448_v35  }
  0x3c   :  { %198 = vmatpush.xpose.msra.mxu0 %v171_v36  ;;  %1023 = vmatpush.xpose.msra.mxu1 %v171_v36 }
  0x3d   :  { %1024 = vmatpush.xpose.msra.mxu2 %v171_v36  ;;  %1025 = vmatpush.xpose.msra.mxu3 %v171_v36 }
  0x40   :  { %199 = vmatpush.xpose.msra.mxu0 %v170_v37  ;;  %1026 = vmatpush.xpose.msra.mxu1 %v170_v37 }
  0x41   :  { %1027 = vmatpush.xpose.msra.mxu2 %v170_v37  ;;  %1028 = vmatpush.xpose.msra.mxu3 %v170_v37  ;;  %v2151_v37 = vmov 0 }
  0x42   :  { %485 = vperm.xlu2 %1042, %v453_v38   ;;  %482 = vperm.xlu1 %1041, %v452_v39   ;;  %v2153_v38 = vmov 0 }
  0x43   :  { %479 = vperm.xlu0 %1040, %v451_v40   ;;  %v2155_v40 = vmov 0 }
  0x44   :  { %200 = vmatpush.xpose.msra.mxu0 %v169_v41  ;;  %1029 = vmatpush.xpose.msra.mxu1 %v169_v41 }
  0x45   :  { %1030 = vmatpush.xpose.msra.mxu2 %v169_v41  ;;  %1031 = vmatpush.xpose.msra.mxu3 %v169_v41 }
  0x47   :  { %201 = vmatmul.f32.vlgmr.msra.gmra.mxu0 %v153_v42  ;;  %213 = vmatmul.f32.vlgmr.msra.gmra.mxu1 %v157_v43  ;;  %v2157_v42 = vmov 0 }
  0x48   :  { %225 = vmatmul.f32.vlgmr.msra.gmra.mxu2 %v161_v44  ;;  %237 = vmatmul.f32.vlgmr.msra.gmra.mxu3 %v165_v45  ;;  %v2159_v44 = vmov 0 }
  0x4a   :  { %494 = vperm.xlu2 %1042, %v456_v46   ;;  %491 = vperm.xlu1 %1041, %v455_v47   ;;  %v2161_v46 = vmov 0 }
  0x4b   :  { %488 = vperm.xlu0 %1040, %v454_v48   ;;  %v2163_v48 = vmov 0 }
  0x4f   :  { %204 = vmatmul.f32.gmra.mxu0 %v154_v49  ;;  %216 = vmatmul.f32.gmra.mxu1 %v158_v50 }
  0x50   :  { %228 = vmatmul.f32.gmra.mxu2 %v162_v51  ;;  %240 = vmatmul.f32.gmra.mxu3 %v166_v52  ;;  %v2165_v51 = vmov 0 }
  0x52   :  { %503 = vperm.xlu2 %1042, %v459_v53   ;;  %500 = vperm.xlu1 %1041, %v458_v54  }
  0x53   :  { %497 = vperm.xlu0 %1040, %v457_v55   ;;  %v2167_v55 = vmov 0 }
  0x57   :  { %207 = vmatmul.f32.gmra.mxu0 %v155_v56  ;;  %219 = vmatmul.f32.gmra.mxu1 %v159_v57 }
  0x58   :  { %231 = vmatmul.f32.gmra.mxu2 %v163_v58  ;;  %243 = vmatmul.f32.gmra.mxu3 %v167_v59 }
  0x5a   :  { %509 = vperm.xlu1 %1041, %v461_v60  }
  0x5b   :  { %506 = vperm.xlu0 %1040, %v460_v61  }
  0x5f   :  { %210 = vmatmul.f32.gmra.mxu0 %v156_v62  ;;  %222 = vmatmul.f32.gmra.mxu1 %v160_v63 }
  0x60   :  { %234 = vmatmul.f32.gmra.mxu2 %v164_v0  ;;  %246 = vmatmul.f32.gmra.mxu3 %v168_v1 }
  0x64   :  { %v290_v3 = vpop.permute.xlu2 %289 }
  0x65   :  { %v354_v4 = vadd.f32 %v1244_v2, %v290_v3 }
  0x6c   :  { %v1247_v5 = vpop.permute.xlu2 %294 }
  0x74   :  { %v310_v6 = vpop.permute.xlu2 %309 }
  0x75   :  { %v358_v61 = vadd.f32 %v1244_v2, %v310_v6 }
  0x7c   :  { %v1262_v7 = vpop.permute.xlu2 %324  ;;  %v280_v8 = vpop.permute.xlu1 %279 }
  0x7d   :  { %v1265_v9 = vadd.f32 %v1244_v2, %v280_v8  ;;  %v270_v10 = vpop.permute.xlu0 %269 }
  0x7e   :  { %v350_v11 = vadd.f32 %v1244_v2, %v270_v10 }
  0x84   :  { %v1268_v12 = vpop.permute.xlu2 %339  ;;  %v285_v13 = vpop.permute.xlu1 %284 }
  0x85   :  { %v1271_v14 = vadd.f32 %v1244_v2, %v285_v13  ;;  %v275_v15 = vpop.permute.xlu0 %274 }
  0x86   :  { %v1274_v16 = vadd.f32 %v1244_v2, %v275_v15 }
  0x8c   :  { %v468_v18 = vpop.permute.xlu2 %467  ;;  %v1281_v19 = vpop.permute.xlu1 %304 }
  0x8d   :  { %vm1283_vm0 = vcmp.eq.s32.totalorder %v468_v18, %v1044_v17  ;;  %v1287_v21 = vpop.permute.xlu0 %299 }
  0x94   :  { %v477_v22 = vpop.permute.xlu2 %476  ;;  %v1289_v23 = vpop.permute.xlu1 %319 }
  0x95   :  { %vm1291_vm1 = vcmp.eq.s32.totalorder %v477_v22, %v1044_v17  ;;  %v1295_v25 = vpop.permute.xlu0 %314 }
  0x96   :  { %v2144_v24 = vsel %vm1291_vm1, 4294967295, %v2143_v24 }
  0x9c   :  { %v486_v26 = vpop.permute.xlu2 %485  ;;  %v1297_v27 = vpop.permute.xlu1 %334 }
  0x9d   :  { %vm1299_vm2 = vcmp.eq.s32.totalorder %v486_v26, %v1044_v17  ;;  %v330_v29 = vpop.permute.xlu0 %329 }
  0x9e   :  { %v2146_v28 = vsel %vm1299_vm2, 4294967295, %v2145_v28  ;;  %v362_v1 = vadd.f32 %v1244_v2, %v330_v29 }
  0xa4   :  { %v495_v30 = vpop.permute.xlu2 %494  ;;  %v465_v31 = vpop.permute.xlu1 %464 }
  0xa5   :  { %vm1303_vm3 = vcmp.eq.s32.totalorder %v495_v30, %v1044_v17  ;;  %vm1307_vm4 = vcmp.eq.s32.totalorder %v465_v31, %v1044_v17  ;;  %v1311_v34 = vpop.permute.xlu0 %344  ;;  %v2172_v30 = vmov 0 }
  0xa6   :  { %v2148_v32 = vsel %vm1303_vm3, 4294967295, %v2147_v32 }
  0xac   :  { %v504_v35 = vpop.permute.xlu2 %503  ;;  %v474_v36 = vpop.permute.xlu1 %473 }
  0xad   :  { %vm1313_vm5 = vcmp.eq.s32.totalorder %v504_v35, %v1044_v17  ;;  %vm1317_vm6 = vcmp.eq.s32.totalorder %v474_v36, %v1044_v17  ;;  %v471_v39 = vpop.permute.xlu0 %470  ;;  %v355_v35 = vadd.f32 %v1244_v2, %v1247_v5  ;;  %v363_v5 = vadd.f32 %v1244_v2, %v1297_v27 }
  0xae   :  { %v2152_v37 = vsel %vm1313_vm5, 4294967295, %v2151_v37  ;;  %v2154_v38 = vsel %vm1317_vm6, 4294967295, %v2153_v38  ;;  %vm1321_vm7 = vcmp.eq.s32.totalorder %v471_v39, %v1044_v17  ;;  %v356_v27 = vadd.f32 %v1244_v2, %v1287_v21 }
  0xaf   :  { %v2156_v40 = vsel %vm1321_vm7, 4294967295, %v2155_v40  ;;  %v360_v21 = vadd.f32 %v1244_v2, %v1289_v23 }
  0xb4   :  { %v483_v41 = vpop.permute.xlu1 %482 }
  0xb5   :  { %vm1325_vm8 = vcmp.eq.s32.totalorder %v483_v41, %v1044_v17  ;;  %v480_v43 = vpop.permute.xlu0 %479 }
  0xb6   :  { %v2158_v42 = vsel %vm1325_vm8, 4294967295, %v2157_v42  ;;  %vm1329_vm9 = vcmp.eq.s32.totalorder %v480_v43, %v1044_v17 }
  0xb7   :  { %v2160_v44 = vsel %vm1329_vm9, 4294967295, %v2159_v44 }
  0xbc   :  { %v492_v45 = vpop.permute.xlu1 %491 }
  0xbd   :  { %vm1333_vm10 = vcmp.eq.s32.totalorder %v492_v45, %v1044_v17  ;;  %v489_v47 = vpop.permute.xlu0 %488 }
  0xbe   :  { %v2162_v46 = vsel %vm1333_vm10, 4294967295, %v2161_v46  ;;  %vm1337_vm11 = vcmp.eq.s32.totalorder %v489_v47, %v1044_v17 }
  0xbf   :  { %v2164_v48 = vsel %vm1337_vm11, 4294967295, %v2163_v48 }
  0xc4   :  { %v501_v49 = vpop.permute.xlu1 %500  ;;  %v202_v50 = vpop.f32.mrf.mxu0 }
  0xc5   :  { %vm1341_vm12 = vcmp.eq.s32.totalorder %v501_v49, %v1044_v17  ;;  %v498_v52 = vpop.permute.xlu0 %497  ;;  %v366_v53 = vmul.f32 2.0, %v202_v50  ;;  %v214_v54 = vpop.f32.mrf.mxu1  ;;  %v359_v50 = vadd.f32 %v1244_v2, %v1295_v25 }
  0xc6   :  { %v2166_v51 = vsel %vm1341_vm12, 4294967295, %v2165_v51  ;;  %vm1345_vm13 = vcmp.eq.s32.totalorder %v498_v52, %v1044_v17  ;;  %v370_v56 = vmul.f32 2.0, %v214_v54 }
  0xc7   :  { %v2168_v55 = vsel %vm1345_vm13, 4294967295, %v2167_v55  ;;  %v382_v57 = vsub.f32 %v350_v11, %v366_v53 }
  0xc8   :  { %v386_v58 = vsub.f32 %v354_v4, %v370_v56  ;;  %v2169_v4 = vmov 0 }
  0xc9   :  { %v1349_v59 = vmax.f32 %v382_v57, 0.0 }
  0xca   :  { %v1351_v60 = vmax.f32 %v386_v58, 0.0 }
  0xcb   :  { %v414_v62 = vsub.f32 1.0, %v1349_v59  ;;  %v226_v63 = vpop.f32.mrf.mxu2  ;;  %v238_v0 = vpop.f32.mrf.mxu3 }
  0xcc   :  { %v418_v3 = vsub.f32 1.0, %v1351_v60  ;;  %v510_v8 = vpop.permute.xlu1 %509  ;;  %v374_v10 = vmul.f32 2.0, %v226_v63  ;;  %v378_v13 = vmul.f32 2.0, %v238_v0  ;;  %v205_v15 = vpop.f32.mrf.mxu0 }
  0xcd   :  { %v1357_v11 = vmax.f32 %v414_v62, 0.0  ;;  %vm1359_vm14 = vcmp.eq.s32.totalorder %v510_v8, %v1044_v17  ;;  %v507_v18 = vpop.permute.xlu0 %506  ;;  %v367_v6 = vmul.f32 2.0, %v205_v15  ;;  %v217_v22 = vpop.f32.mrf.mxu1 }
  0xce   :  { %v2170_v4 = vsel %vm1359_vm14, 4294967295, %v2169_v4  ;;  %v1363_v26 = vmax.f32 %v418_v3, 0.0  ;;  %vm1365_vm15 = vcmp.eq.s32.totalorder %v507_v18, %v1044_v17  ;;  %v390_v29 = vsub.f32 %v358_v61, %v374_v10 }
  0xcf   :  { %v2173_v30 = vsel %vm1365_vm15, 4294967295, %v2172_v30  ;;  %v394_v31 = vsub.f32 %v362_v1, %v378_v13  ;;  %v383_v36 = vsub.f32 %v1274_v16, %v367_v6  ;;  %v371_v39 = vmul.f32 2.0, %v217_v22 }
  0xd0   :  { %2171 = vst [vmem:[#allocation8_spill] sm:$0xff] %v1363_v26  ;;  %v1372_v41 = vmax.f32 %v390_v29, 0.0 }
  0xd1   :  { %v1374_v43 = vmax.f32 %v394_v31, 0.0  ;;  %v1376_v45 = vmax.f32 %v383_v36, 0.0  ;;  %v387_v47 = vsub.f32 %v355_v35, %v371_v39 }
  0xd2   :  { %v422_v17 = vsub.f32 1.0, %v1372_v41 }
  0xd3   :  { %v426_v49 = vsub.f32 1.0, %v1374_v43  ;;  %v415_v16 = vsub.f32 1.0, %v1376_v45  ;;  %v1385_v52 = vmax.f32 %v387_v47, 0.0  ;;  %v229_v53 = vpop.f32.mrf.mxu2  ;;  %v241_v54 = vpop.f32.mrf.mxu3 }
  0xd4   :  { %v1387_v56 = vmax.f32 %v422_v17, 0.0  ;;  %v375_v58 = vmul.f32 2.0, %v229_v53  ;;  %v379_v61 = vmul.f32 2.0, %v241_v54  ;;  %v208_v62 = vpop.f32.mrf.mxu0  ;;  %v364_v53 = vadd.f32 %v1244_v2, %v1268_v12 }
  0xd5   :  { %v1389_v57 = vmax.f32 %v426_v49, 0.0  ;;  %v1391_v63 = vmax.f32 %v415_v16, 0.0  ;;  %v419_v25 = vsub.f32 1.0, %v1385_v52  ;;  %v368_v0 = vmul.f32 2.0, %v208_v62  ;;  %v220_v1 = vpop.f32.mrf.mxu1 }
  0xd6   :  { %2174 = vst [vmem:[#allocation9_spill] sm:$0xff] %v1387_v56  ;;  %v391_v3 = vsub.f32 %v359_v50, %v375_v58  ;;  %v395_v8 = vsub.f32 %v363_v5, %v379_v61  ;;  %v372_v10 = vmul.f32 2.0, %v220_v1  ;;  %v357_v62 = vadd.f32 %v1244_v2, %v1281_v19 }
  0xd7   :  { %2175 = vst [vmem:[#allocation10_spill] sm:$0xff] %v1389_v57  ;;  %v1396_v13 = vmax.f32 %v419_v25, 0.0  ;;  %v384_v15 = vsub.f32 %v1265_v9, %v368_v0  ;;  %v361_v19 = vadd.f32 %v1244_v2, %v1262_v7 }
  0xd8   :  { %v1399_v18 = vmax.f32 %v391_v3, 0.0  ;;  %v1401_v6 = vmax.f32 %v395_v8, 0.0  ;;  %v388_v22 = vsub.f32 %v356_v27, %v372_v10 }
  0xd9   :  { %2176 = vst [vmem:[#allocation11_spill] sm:$0xff] %v1396_v13  ;;  %v1403_v29 = vmax.f32 %v384_v15, 0.0 }
  0xda   :  { %v423_v31 = vsub.f32 1.0, %v1399_v18  ;;  %v427_v35 = vsub.f32 1.0, %v1401_v6  ;;  %v1407_v36 = vmax.f32 %v388_v22, 0.0 }
  0xdb   :  { %v416_v39 = vsub.f32 1.0, %v1403_v29  ;;  %v232_v47 = vpop.f32.mrf.mxu2  ;;  %v244_v9 = vpop.f32.mrf.mxu3 }
  0xdc   :  { %v1412_v17 = vmax.f32 %v423_v31, 0.0  ;;  %v1414_v49 = vmax.f32 %v427_v35, 0.0  ;;  %v420_v50 = vsub.f32 1.0, %v1407_v36  ;;  %v376_v5 = vmul.f32 2.0, %v232_v47  ;;  %v211_v16 = vpop.f32.mrf.mxu0 }
  0xdd   :  { %v1419_v54 = vmax.f32 %v416_v39, 0.0  ;;  %v380_v58 = vmul.f32 2.0, %v244_v9  ;;  %v369_v61 = vmul.f32 2.0, %v211_v16  ;;  %v223_v23 = vpop.f32.mrf.mxu1  ;;  %v365_v35 = vadd.f32 %v1244_v2, %v1311_v34 }
  0xde   :  { %2177 = vst [vmem:[#allocation12_spill] sm:$0xff] %v1412_v17  ;;  %v1423_v25 = vmax.f32 %v420_v50, 0.0  ;;  %v392_v0 = vsub.f32 %v360_v21, %v376_v5  ;;  %v373_v1 = vmul.f32 2.0, %v223_v23 }
  0xdf   :  { %2178 = vst [vmem:[#allocation13_spill] sm:$0xff] %v1414_v49  ;;  %v396_v27 = vsub.f32 %v364_v53, %v380_v58  ;;  %v385_v3 = vsub.f32 %v1271_v14, %v369_v61 }
  0xe0   :  { %2179 = vst [vmem:[#allocation14_spill] sm:$0xff] %v1423_v25  ;;  %v1426_v8 = vmax.f32 %v392_v0, 0.0  ;;  %v389_v10 = vsub.f32 %v357_v62, %v373_v1 }
  0xe1   :  { %v1428_v15 = vmax.f32 %v396_v27, 0.0  ;;  %v1430_v12 = vmax.f32 %v385_v3, 0.0 }
  0xe2   :  { %v424_v22 = vsub.f32 1.0, %v1426_v8  ;;  %v1433_v31 = vmax.f32 %v389_v10, 0.0 }
  0xe3   :  { %v428_v21 = vsub.f32 1.0, %v1428_v15  ;;  %v417_v14 = vsub.f32 1.0, %v1430_v12  ;;  %v235_v39 = vpop.f32.mrf.mxu2  ;;  %v247_v47 = vpop.f32.mrf.mxu3 }
  0xe4   :  { %v1441_v9 = vmax.f32 %v424_v22, 0.0  ;;  %v421_v50 = vsub.f32 1.0, %v1433_v31  ;;  %v377_v5 = vmul.f32 2.0, %v235_v39  ;;  %v381_v16 = vmul.f32 2.0, %v247_v47 }
  0xe5   :  { %v1444_v53 = vmax.f32 %v428_v21, 0.0  ;;  %v1446_v58 = vmax.f32 %v417_v14, 0.0 }
  0xe6   :  { %2180 = vst [vmem:[#allocation15_spill] sm:$0xff] %v1441_v9  ;;  %v1448_v7 = vmax.f32 %v421_v50, 0.0  ;;  %v393_v61 = vsub.f32 %v361_v19, %v377_v5  ;;  %v397_v2 = vsub.f32 %v365_v35, %v381_v16 }
  0xe7   :  { %2181 = vst [vmem:[#allocation16_spill] sm:$0xff] %v1444_v53 }
  0xe8   :  { %2182 = vst [vmem:[#allocation17_spill] sm:$0xff] %v1446_v58  ;;  %v1450_v34 = vmax.f32 %v393_v61, 0.0  ;;  %v1452_v23 = vmax.f32 %v397_v2, 0.0 }
  0xe9   :  { %2183 = vst [vmem:[#allocation18_spill] sm:$0xff] %v1448_v7 }
  0xea   :  { %v425_v62 = vsub.f32 1.0, %v1450_v34  ;;  %v429_v0 = vsub.f32 1.0, %v1452_v23 }
  0xeb   :  { %533 = sbr.rel (%p1258_p5) target bundleno = 282 (0x11a), region = 33 }
  0xec   :  { %v1456_v1 = vmax.f32 %v425_v62, 0.0  ;;  %v1458_v27 = vmax.f32 %v429_v0, 0.0 }
  0xee   :  { %2184 = vst [vmem:[#allocation19_spill] sm:$0xff] %v1456_v1 }
  0xef   :  { %2185 = vst [vmem:[#allocation20_spill] sm:$0xff] %v1458_v27 }
  0xf0   :  { %v534_v3 = vsel %vm1307_vm4, %v1349_v59, 0.0  ;;  %v535_v10 = vsel %vm1283_vm0, %v1376_v45, 0.0  ;;  %v536_v22 = vsel %vm1321_vm7, %v1403_v29, 0.0  ;;  %v537_v35 = vsel %vm1317_vm6, %v1430_v12, 0.0 }
  0xf1   :  { %v599_v19 = vadd.f32 %v535_v10, %v534_v3  ;;  %v550_v21 = vsel %vm1307_vm4, 0.0, %v1357_v11  ;;  %v551_v14 = vsel %vm1283_vm0, 0.0, %v1391_v63  ;;  %v538_v47 = vsel %vm1291_vm1, %v1351_v60, 0.0 }
  0xf2   :  { %v552_v50 = vsel %vm1321_vm7, 0.0, %v1419_v54  ;;  %v617_v16 = vadd.f32 %v551_v14, %v550_v21  ;;  %v539_v61 = vsel %vm1329_vm9, %v1385_v52, 0.0  ;;  %v553_v2 = vsel %vm1317_vm6, 0.0, %v1446_v58 }
  0xf3   :  { %v600_v39 = vadd.f32 %v599_v19, %v536_v22  ;;  %v540_v3 = vsel %vm1325_vm8, %v1407_v36, 0.0  ;;  %v554_v10 = vsel %vm1291_vm1, 0.0, %v1363_v26 }
  0xf4   :  { %v618_v0 = vadd.f32 %v617_v16, %v552_v50 }
  0xf5   :  { %v601_v5 = vadd.f32 %v600_v39, %v537_v35  ;;  %v1073_v35 = vmov 0.0   ;;  %v541_v39 = vsel %vm1299_vm2, %v1433_v31, 0.0 }
  0xf6   :  { %v619_v19 = vadd.f32 %v618_v0, %v553_v2  ;;  %v950_v21 = vsel %vm1307_vm4, 1.0, %v1073_v35  ;;  %v951_v14 = vsel %vm1283_vm0, 1.0, %v1073_v35  ;;  %v952_v16 = vsel %vm1321_vm7, 1.0, %v1073_v35 }
  0xf7   :  { %v602_v62 = vadd.f32 %v601_v5, %v538_v47  ;;  %v555_v47 = vsel %vm1329_vm9, 0.0, %v1396_v13  ;;  %v556_v2 = vsel %vm1325_vm8, 0.0, %v1423_v25 }
  0xf8   :  { %v620_v5 = vadd.f32 %v619_v19, %v554_v10  ;;  %v543_v10 = vsel %vm1333_vm10, %v1399_v18, 0.0 }
  0xf9   :  { %v603_v22 = vadd.f32 %v602_v62, %v539_v61  ;;  %v542_v61 = vsel %vm1337_vm11, %v1372_v41, 0.0  ;;  %v635_v62 = vadd.f32 %v951_v14, %v950_v21  ;;  %v954_v21 = vsel %vm1291_vm1, 1.0, %v1073_v35 }
  0xfa   :  { %v621_v26 = vadd.f32 %v620_v5, %v555_v47  ;;  %v544_v14 = vsel %vm1303_vm3, %v1426_v8, 0.0 }
  0xfb   :  { %v604_v50 = vadd.f32 %v603_v22, %v540_v3  ;;  %v953_v3 = vsel %vm1317_vm6, 1.0, %v1073_v35  ;;  %v557_v22 = vsel %vm1299_vm2, 0.0, %v1448_v7  ;;  %v636_v19 = vadd.f32 %v952_v16, %v635_v62 }
  0xfc   :  { %v622_v58 = vadd.f32 %v621_v26, %v556_v2  ;;  %v955_v16 = vsel %vm1329_vm9, 1.0, %v1073_v35  ;;  %v545_v26 = vsel %vm1345_vm13, %v1450_v34, 0.0 }
  0xfd   :  { %v605_v0 = vadd.f32 %v604_v50, %v541_v39  ;;  %v558_v39 = vsel %vm1337_vm11, 0.0, %v1387_v56  ;;  %v637_v47 = vadd.f32 %v953_v3, %v636_v19  ;;  %v560_v3 = vsel %vm1303_vm3, 0.0, %v1441_v9 }
  0xfe   :  { %v623_v5 = vadd.f32 %v622_v58, %v557_v22  ;;  %v546_v58 = vsel %vm1341_vm12, %v1374_v43, 0.0 }
  0xff   :  { %v606_v13 = vadd.f32 %v605_v0, %v542_v61  ;;  %v559_v61 = vsel %vm1333_vm10, 0.0, %v1412_v17  ;;  %v638_v2 = vadd.f32 %v954_v21, %v637_v47  ;;  %v957_v21 = vsel %vm1299_vm2, 1.0, %v1073_v35 }
 0x100   :  { %v624_v0 = vadd.f32 %v623_v5, %v558_v39  ;;  %v561_v39 = vsel %vm1345_vm13, 0.0, %v1456_v1 }
 0x101   :  { %v607_v50 = vadd.f32 %v606_v13, %v543_v10  ;;  %v956_v13 = vsel %vm1325_vm8, 1.0, %v1073_v35  ;;  %v639_v10 = vadd.f32 %v955_v16, %v638_v2  ;;  %v958_v16 = vsel %vm1337_vm11, 1.0, %v1073_v35 }
 0x102   :  { %v625_v19 = vadd.f32 %v624_v0, %v559_v61  ;;  %v562_v61 = vsel %vm1341_vm12, 0.0, %v1389_v57  ;;  %v961_v57 = vsel %vm1345_vm13, 1.0, %v1073_v35 }
 0x103   :  { %v608_v62 = vadd.f32 %v607_v50, %v544_v14  ;;  %v547_v14 = vsel %vm1313_vm5, %v1401_v6, 0.0  ;;  %v640_v47 = vadd.f32 %v956_v13, %v639_v10  ;;  %v959_v13 = vsel %vm1333_vm10, 1.0, %v1073_v35 }
 0x104   :  { %v626_v5 = vadd.f32 %v625_v19, %v560_v3  ;;  %v563_v3 = vsel %vm1313_vm5, 0.0, %v1414_v49 }
 0x105   :  { %v609_v22 = vadd.f32 %v608_v62, %v545_v26  ;;  %v548_v26 = vsel %vm1365_vm15, %v1428_v15, 0.0  ;;  %v641_v2 = vadd.f32 %v957_v21, %v640_v47  ;;  %v960_v21 = vsel %vm1303_vm3, 1.0, %v1073_v35 }
 0x106   :  { %v627_v0 = vadd.f32 %v626_v5, %v561_v39  ;;  %v564_v39 = vsel %vm1365_vm15, 0.0, %v1444_v53 }
 0x107   :  { %v610_v50 = vadd.f32 %v609_v22, %v546_v58  ;;  %v549_v58 = vsel %vm1359_vm14, %v1452_v23, 0.0  ;;  %v642_v10 = vadd.f32 %v958_v16, %v641_v2  ;;  %v565_v16 = vsel %vm1359_vm14, 0.0, %v1458_v27 }
 0x108   :  { %v628_v19 = vadd.f32 %v627_v0, %v562_v61  ;;  %v616_v0 = vld [vmem:[#allocation5 + $0x8] sm:$0xff] }
 0x109   :  { %v611_v62 = vadd.f32 %v610_v50, %v547_v14  ;;  %v598_v14 = vld [vmem:[#allocation5] sm:$0xff]  ;;  %v643_v47 = vadd.f32 %v959_v13, %v642_v10 }
 0x10a   :  { %v629_v5 = vadd.f32 %v628_v19, %v563_v3 }
 0x10b   :  { %v612_v22 = vadd.f32 %v611_v62, %v548_v26  ;;  %v644_v26 = vadd.f32 %v960_v21, %v643_v47  ;;  %v962_v62 = vsel %vm1341_vm12, 1.0, %v1073_v35  ;;  %v965_v21 = vsel %vm1359_vm14, 1.0, %v1073_v35 }
 0x10c   :  { %v630_v2 = vadd.f32 %v629_v5, %v564_v39 }
 0x10d   :  { %v613_v50 = vadd.f32 %v612_v22, %v549_v58  ;;  %v645_v53 = vadd.f32 %v961_v57, %v644_v26  ;;  %v963_v58 = vsel %vm1313_vm5, 1.0, %v1073_v35  ;;  %v964_v22 = vsel %vm1365_vm15, 1.0, %v1073_v35  ;;  %v634_v57 = vld [vmem:[#allocation5 + $0x10] sm:$0xff] }
 0x10e   :  { %v631_v13 = vadd.f32 %v630_v2, %v565_v16 }
 0x10f   :  { %v614_v61 = vadd.f32 %v613_v50, %v598_v14  ;;  %v646_v3 = vadd.f32 %v962_v62, %v645_v53 }
 0x110   :  { %v632_v10 = vadd.f32 %v631_v13, %v616_v0 }
 0x111   :  { %615 = vst [vmem:[#allocation5] sm:$0xff] %v614_v61  ;;  %v647_v19 = vadd.f32 %v963_v58, %v646_v3 }
 0x112   :  { %633 = vst [vmem:[#allocation5 + $0x8] sm:$0xff] %v632_v10 }
 0x113   :  { %v648_v14 = vadd.f32 %v964_v22, %v647_v19 }
 0x115   :  { %v649_v39 = vadd.f32 %v965_v21, %v648_v14 }
 0x117   :  { %v650_v47 = vadd.f32 %v649_v39, %v634_v57 }
 0x119   :  { %651 = vst [vmem:[#allocation5 + $0x10] sm:$0xff] %v650_v47 }
 0x11a PF:  { %654 = sbr.rel (!%p1258_p5) target bundleno = 370 (0x172), region = 37  ;;  %v656_v53 = vlaneseq (%p1258_p5)  ;;  %s966_s21 = sshll.u32 (%p1258_p5), %s2070_s0, 7  ;;  %v2204_v49 = vmov (%p1258_p5), 0  ;;  %v2232_v20 = vmov (%p1258_p5), 0 }
 0x11b   :  { %s967_s24 = sshll.u32 (%p1258_p5), %s2071_s1, 7  ;;  %v1617_v16 = vstv (%p1258_p5), %s966_s21 }
 0x11c   :  { %v1608_v50 = vshrl.u32 (%p1258_p5), %v656_v53, 7  ;;  %v692_v35 = vand.u32 (%p1258_p5), 127, %v656_v53  ;;  %v693_v26 = vstv (%p1258_p5), %s967_s24 }
 0x11e   :  { %v658_v5 = vadd.s32 (%p1258_p5), 8, %v1608_v50  ;;  %v659_v61 = vadd.s32 (%p1258_p5), 16, %v1608_v50  ;;  %v660_v2 = vadd.s32 (%p1258_p5), 24, %v1608_v50  ;;  %v661_v62 = vadd.s32 (%p1258_p5), 32, %v1608_v50 }
 0x11f   :  { %v674_v0 = vadd.s32 %v1617_v16, %v1608_v50  ;;  %v1624_v13 = vadd.s32 %v693_v26, %v692_v35  ;;  %v662_v58 = vadd.s32 40, %v1608_v50  ;;  %v663_v10 = vadd.s32 48, %v1608_v50 }
 0x120   :  { %v675_v3 = vadd.s32 %v1617_v16, %v658_v5  ;;  %v676_v22 = vadd.s32 %v1617_v16, %v659_v61  ;;  %v664_v19 = vadd.s32 56, %v1608_v50  ;;  %v677_v21 = vadd.s32 %v1617_v16, %v660_v2 }
 0x121   :  { %v665_v14 = vadd.s32 64, %v1608_v50  ;;  %v678_v57 = vadd.s32 %v1617_v16, %v661_v62  ;;  %vm695_vm14 = vcmp.lt.s32.totalorder %v674_v0, %v1624_v13  ;;  %vm2119_vm15 = vcmp.lt.s32.totalorder %v1624_v13, 8 }
 0x122   :  { %v679_v39 = vadd.s32 %v1617_v16, %v662_v58  ;;  %vm696_vm5 = vcmp.lt.s32.totalorder %v675_v3, %v1624_v13  ;;  %v666_v47 = vadd.s32 72, %v1608_v50  ;;  %v680_v53 = vadd.s32 %v1617_v16, %v663_v10  ;;  %vm1645_vm3 = vmand %vm695_vm14, %vm2119_vm15 }
 0x123   :  { %vm697_vm12 = vcmp.lt.s32.totalorder %v676_v22, %v1624_v13  ;;  %v681_v35 = vadd.s32 %v1617_v16, %v664_v19  ;;  %vm698_vm13 = vcmp.lt.s32.totalorder %v677_v21, %v1624_v13  ;;  %v2186_v5 = vmov 0  ;;  %vm1653_vm11 = vmand %vm696_vm5, %vm2119_vm15 }
 0x124   :  { %v2187_v5 = vsel %vm1645_vm3, 4294967295, %v2186_v5  ;;  %v682_v26 = vadd.s32 %v1617_v16, %v665_v14  ;;  %vm699_vm10 = vcmp.lt.s32.totalorder %v678_v57, %v1624_v13  ;;  %v2188_v61 = vmov 0  ;;  %vm1661_vm14 = vmand %vm697_vm12, %vm2119_vm15 }
 0x125   :  { %v2189_v61 = vsel %vm1653_vm11, 4294967295, %v2188_v61  ;;  %v667_v2 = vadd.s32 80, %v1608_v50  ;;  %vm700_vm2 = vcmp.lt.s32.totalorder %v679_v39, %v1624_v13  ;;  %v2190_v62 = vmov 0  ;;  %vm1669_vm5 = vmand %vm698_vm13, %vm2119_vm15 }
 0x126   :  { %v2191_v62 = vsel %vm1661_vm14, 4294967295, %v2190_v62  ;;  %v683_v0 = vadd.s32 %v1617_v16, %v666_v47  ;;  %vm701_vm8 = vcmp.lt.s32.totalorder %v680_v53, %v1624_v13  ;;  %v2192_v58 = vmov 0  ;;  %vm1676_vm1 = vmand %vm699_vm10, %vm2119_vm15 }
 0x127   :  { %v2193_v58 = vsel %vm1669_vm5, 4294967295, %v2192_v58  ;;  %vm702_vm9 = vcmp.lt.s32.totalorder %v681_v35, %v1624_v13  ;;  %v2194_v3 = vmov 0  ;;  %v668_v10 = vadd.s32 88, %v1608_v50  ;;  %vm1684_vm6 = vmand %vm700_vm2, %vm2119_vm15 }
 0x128   :  { %v2195_v3 = vsel %vm1676_vm1, 4294967295, %v2194_v3  ;;  %vm703_vm12 = vcmp.lt.s32.totalorder %v682_v26, %v1624_v13  ;;  %v2196_v22 = vmov 0  ;;  %v669_v19 = vadd.s32 96, %v1608_v50  ;;  %vm1692_vm10 = vmand %vm701_vm8, %vm2119_vm15 }
 0x129   :  { %v2197_v22 = vsel %vm1684_vm6, 4294967295, %v2196_v22  ;;  %v684_v21 = vadd.s32 %v1617_v16, %v667_v2  ;;  %v2198_v14 = vmov 0  ;;  %vm704_vm13 = vcmp.lt.s32.totalorder %v683_v0, %v1624_v13  ;;  %vm1699_vm1 = vmand %vm702_vm9, %vm2119_vm15 }
 0x12a   :  { %v2199_v14 = vsel %vm1692_vm10, 4294967295, %v2198_v14  ;;  %v2200_v57 = vmov 0  ;;  %v670_v39 = vadd.s32 104, %v1608_v50  ;;  %vm1706_vm2 = vmand %vm703_vm12, %vm2119_vm15  ;;  %v2202_v47 = vmov 0 }
 0x12b   :  { %v2201_v57 = vsel %vm1699_vm1, 4294967295, %v2200_v57  ;;  %v2203_v47 = vsel %vm1706_vm2, 4294967295, %v2202_v47  ;;  %vm728_vm8 = vmand %vm1307_vm4, %vm1645_vm3  ;;  %v671_v53 = vadd.s32 112, %v1608_v50  ;;  %v685_v35 = vadd.s32 %v1617_v16, %v668_v10 }
 0x12c   :  { %vm729_vm9 = vmand %vm1283_vm0, %vm1653_vm11  ;;  %v776_v26 = vsel %vm728_vm8, %v1349_v59, 0.0  ;;  %v1074_v2 = vmov 0.0   ;;  %v686_v27 = vadd.s32 %v1617_v16, %v669_v19  ;;  %v672_v56 = vadd.s32 120, %v1608_v50 }
 0x12d   :  { %v968_v0 = vsel %vm728_vm8, 1.0, %v1074_v2  ;;  %vm1726_vm3 = vmand %vm704_vm13, %vm2119_vm15  ;;  %v777_v59 = vsel %vm729_vm9, %v1376_v45, 0.0  ;;  %v969_v10 = vsel %vm729_vm9, 1.0, %v1074_v2  ;;  %vm2206_vm8 = vnez %v2154_v38 }
 0x12e   :  { %v2205_v49 = vsel %vm1726_vm3, 4294967295, %v2204_v49  ;;  %vm730_vm11 = vmand %vm1321_vm7, %vm1661_vm14  ;;  %v841_v9 = vadd.f32 %v777_v59, %v776_v26  ;;  %v877_v17 = vadd.f32 %v969_v10, %v968_v0  ;;  %vm2207_vm13 = vnez %v2195_v3 }
 0x12f   :  { %vm731_vm12 = vmand %vm2206_vm8, %vm1669_vm5  ;;  %v778_v19 = vsel %vm730_vm11, %v1403_v29, 0.0  ;;  %v970_v1 = vsel %vm730_vm11, 1.0, %v1074_v2  ;;  %vm2208_vm15 = vnez %v2144_v24  ;;  %v687_v25 = vadd.s32 %v1617_v16, %v670_v39 }
 0x130   :  { %vm732_vm14 = vmand %vm2208_vm15, %vm2207_vm13  ;;  %v779_v45 = vsel %vm731_vm12, %v1430_v12, 0.0  ;;  %v971_v7 = vsel %vm731_vm12, 1.0, %v1074_v2  ;;  %vm706_vm9 = vcmp.lt.s32.totalorder %v685_v35, %v1624_v13  ;;  %vm2209_vm11 = vnez %v2160_v44 }
 0x131   :  { %vm733_vm5 = vmand %vm2209_vm11, %vm1684_vm6  ;;  %v842_v29 = vadd.f32 %v841_v9, %v778_v19  ;;  %v878_v50 = vadd.f32 %v970_v1, %v877_v17  ;;  %vm2210_vm8 = vcmp.lt.s32.totalorder %v1624_v13, 8  ;;  %vm2211_vm7 = vcmp.lt.s32.totalorder %v684_v21, %v1624_v13 }
 0x132   :  { %vm1759_vm13 = vmand %vm2211_vm7, %vm2210_vm8  ;;  %v2212_v26 = vmov 0  ;;  %v780_v12 = vsel %vm732_vm14, %v1351_v60, 0.0  ;;  %v972_v39 = vsel %vm732_vm14, 1.0, %v1074_v2  ;;  %v688_v35 = vadd.s32 %v1617_v16, %v671_v53 }
 0x133   :  { %v2213_v26 = vsel %vm1759_vm13, 4294967295, %v2212_v26  ;;  %vm707_vm12 = vcmp.lt.s32.totalorder %v686_v27, %v1624_v13  ;;  %vm2214_vm6 = vnez %v2158_v42  ;;  %v843_v17 = vadd.f32 %v842_v29, %v779_v45  ;;  %vm2215_vm7 = vmmov %vm2210_vm8 }
 0x134   :  { %vm734_vm11 = vmand %vm2214_vm6, %vm1692_vm10  ;;  %v879_v9 = vadd.f32 %v971_v7, %v878_v50  ;;  %v2216_v1 = vmov 0  ;;  %v781_v60 = vsel %vm733_vm5, %v1385_v52, 0.0  ;;  %v973_v21 = vsel %vm733_vm5, 1.0, %v1074_v2 }
 0x135   :  { %vm1773_vm8 = vmand %vm706_vm9, %vm2215_vm7  ;;  %v689_v53 = vadd.s32 %v1617_v16, %v672_v56  ;;  %vm708_vm14 = vcmp.lt.s32.totalorder %v687_v25, %v1624_v13  ;;  %vm2218_vm10 = vnez %v2146_v28  ;;  %v844_v7 = vadd.f32 %v843_v17, %v780_v12  ;;  %v876_v17 = vld [vmem:[#allocation5 + $0x10] sm:$0xff] }
 0x136   :  { %v2217_v1 = vsel %vm1773_vm8, 4294967295, %v2216_v1  ;;  %vm735_vm6 = vmand %vm2218_vm10, %vm1699_vm1  ;;  %v880_v27 = vadd.f32 %v972_v39, %v879_v9  ;;  %v2220_v0 = vmov 0  ;;  %v782_v52 = vsel %vm734_vm11, %v1407_v36, 0.0 }
 0x137   :  { %vm2219_vm9 = vmmov %vm2215_vm7  ;;  %v974_v59 = vsel %vm734_vm11, 1.0, %v1074_v2  ;;  %vm2222_vm8 = vnez %v2164_v48  ;;  %vm2134_vm1 = vmmov 1   ;;  %v2223_v56 = vmov 0 }
 0x138   :  { %vm1787_vm7 = vmand %vm707_vm12, %vm2219_vm9  ;;  %v845_v25 = vadd.f32 %v844_v7, %v781_v60  ;;  %v881_v16 = vadd.f32 %v973_v21, %v880_v27  ;;  %v2228_v10 = vmov 0  ;;  %v783_v33 = vsel %vm735_vm6, %v1433_v31, 0.0 }
 0x139   :  { %v2221_v0 = vsel %vm1787_vm7, 4294967295, %v2220_v0  ;;  %vm1801_vm10 = vmxor %vm1307_vm4, %vm2134_vm1  ;;  %v975_v19 = vsel %vm735_vm6, 1.0, %v1074_v2  ;;  %vm710_vm4 = vcmp.lt.s32.totalorder %v689_v53, %v1624_v13  ;;  %vm2231_vm15 = vnez %v2156_v40 }
 0x13a   :  { %v2224_v56 = vsel %vm1801_vm10, 4294967295, %v2223_v56  ;;  %vm2225_vm12 = vmmov %vm2219_vm9  ;;  %v846_v45 = vadd.f32 %v845_v25, %v782_v52  ;;  %v882_v29 = vadd.f32 %v974_v59, %v881_v16  ;;  %vm2235_vm6 = vcmp.lt.s32.totalorder %v688_v35, %v1624_v13 }
 0x13b   :  { %vm1807_vm11 = vmand %vm708_vm14, %vm2225_vm12  ;;  %vm2230_vm14 = vnez %v2162_v46  ;;  %v2236_v31 = vmov 0  ;;  %v2239_v50 = vmov 0  ;;  %v2248_v35 = vmov 0 }
 0x13c   :  { %vm1814_vm9 = vmxor %vm1283_vm0, %vm2134_vm1  ;;  %vm2234_vm0 = vcmp.lt.s32.totalorder %v1624_v13, 8  ;;  %v883_v39 = vadd.f32 %v975_v19, %v882_v29 }
 0x13d   :  { %v2229_v10 = vsel %vm1814_vm9, 4294967295, %v2228_v10  ;;  %vm737_vm12 = vmand %vm2230_vm14, %vm1726_vm3  ;;  %vm2238_vm3 = vnez %v2154_v38  ;;  %v2291_v38 = vld [vmem:[#allocation11_spill] sm:$0xff] }
 0x13e   :  { %vm1828_vm5 = vmxor %vm2231_vm15, %vm2134_vm1  ;;  %v977_v9 = vsel %vm737_vm12, 1.0, %v1074_v2 }
 0x13f   :  { %v2233_v20 = vsel %vm1828_vm5, 4294967295, %v2232_v20  ;;  %vm1836_vm9 = vmand %vm2235_vm6, %vm2234_vm0 }
 0x140   :  { %v2237_v31 = vsel %vm1836_vm9, 4294967295, %v2236_v31  ;;  %vm1843_vm14 = vmxor %vm2238_vm3, %vm2134_vm1  ;;  %vm2243_vm3 = vnez %v2148_v32 }
 0x141   :  { %v2240_v50 = vsel %vm1843_vm14, 4294967295, %v2239_v50  ;;  %vm2241_vm15 = vmand %vm2222_vm8, %vm1706_vm2  ;;  %vm2244_vm14 = vnez %v2144_v24  ;;  %v785_v24 = vsel %vm737_vm12, %v1399_v18, 0.0  ;;  %vm2259_vm12 = vnez %v2152_v37  ;;  %v2312_v37 = vld [vmem:[#allocation10_spill] sm:$0xff] }
 0x142   :  { %v784_v40 = vsel %vm2241_vm15, %v1372_v41, 0.0  ;;  %vm2242_vm0 = vmmov %vm2241_vm15  ;;  %v847_v41 = vadd.f32 %v846_v45, %v783_v33  ;;  %vm2247_vm15 = vcmp.lt.s32.totalorder %v1624_v13, 8  ;;  %v2284_v45 = vld [vmem:[#allocation8_spill] sm:$0xff] }
 0x143   :  { %v976_v12 = vsel %vm2242_vm0, 1.0, %v1074_v2  ;;  %vm738_vm6 = vmand %vm2243_vm3, %vm1759_vm13  ;;  %vm2250_vm0 = vnez %v2160_v44  ;;  %vm2254_vm13 = vnez %v2168_v55  ;;  %v2257_v44 = vmov 0 }
 0x144   :  { %vm1866_vm5 = vmxor %vm2244_vm14, %vm2134_vm1  ;;  %vm2253_vm14 = vnez %v2217_v1  ;;  %v848_v13 = vadd.f32 %v847_v41, %v784_v40  ;;  %v884_v60 = vadd.f32 %v976_v12, %v883_v39  ;;  %v786_v18 = vsel %vm738_vm6, %v1426_v8, 0.0  ;;  %v840_v39 = vld [vmem:[#allocation5] sm:$0xff] }
 0x145   :  { %vm1872_vm10 = vmand %vm710_vm4, %vm2247_vm15  ;;  %vm2255_vm4 = vnez %v2166_v51  ;;  %v978_v21 = vsel %vm738_vm6, 1.0, %v1074_v2 }
 0x146   :  { %v2249_v35 = vsel %vm1872_vm10, 4294967295, %v2248_v35  ;;  %vm1879_vm2 = vmxor %vm2250_vm0, %vm2134_vm1  ;;  %vm2256_vm0 = vnez %v2158_v42  ;;  %v849_v53 = vadd.f32 %v848_v13, %v785_v24  ;;  %v885_v7 = vadd.f32 %v977_v9, %v884_v60  ;;  %v2296_v9 = vld [vmem:[#allocation14_spill] sm:$0xff] }
 0x147   :  { %vm739_vm3 = vmand %vm2254_vm13, %vm2253_vm14  ;;  %vm2263_vm14 = vnez %v2224_v56  ;;  %vm2267_vm10 = vnez %v2233_v20 }
 0x148   :  { %vm740_vm15 = vmand %vm2255_vm4, %vm1787_vm7  ;;  %vm2260_vm7 = vnez %v2173_v30  ;;  %v787_v42 = vsel %vm739_vm3, %v1450_v34, 0.0  ;;  %v979_v27 = vsel %vm739_vm3, 1.0, %v1074_v2  ;;  %v850_v8 = vadd.f32 %v849_v53, %v786_v18  ;;  %v2304_v53 = vld [vmem:[#allocation9_spill] sm:$0xff] }
 0x149   :  { %vm1896_vm8 = vmxor %vm2256_vm0, %vm2134_vm1  ;;  %v886_v52 = vadd.f32 %v978_v21, %v885_v7  ;;  %vm2262_vm1 = vnez %v2187_v5  ;;  %v788_v59 = vsel %vm740_vm15, %v1374_v43, 0.0  ;;  %v980_v25 = vsel %vm740_vm15, 1.0, %v1074_v2 }
 0x14a   :  { %v2258_v44 = vsel %vm1896_vm8, 4294967295, %v2257_v44  ;;  %vm760_vm13 = vmand %vm2263_vm14, %vm2262_vm1  ;;  %vm2264_vm4 = vnez %v2189_v61  ;;  %vm2265_vm3 = vnez %v2229_v10  ;;  %v851_v16 = vadd.f32 %v850_v8, %v787_v42 }
 0x14b   :  { %vm761_vm8 = vmand %vm2265_vm3, %vm2264_vm4  ;;  %v792_v34 = vsel %vm760_vm13, %v1357_v11, 0.0  ;;  %v887_v33 = vadd.f32 %v979_v27, %v886_v52  ;;  %vm2266_vm0 = vnez %v2191_v62  ;;  %vm2270_vm14 = vnez %v2193_v58  ;;  %v2309_v27 = vld [vmem:[#allocation15_spill] sm:$0xff] }
 0x14c   :  { %vm762_vm6 = vmand %vm2267_vm10, %vm2266_vm0  ;;  %v793_v5 = vsel %vm761_vm8, %v1391_v63, 0.0  ;;  %vm2271_vm10 = vnez %v2240_v50  ;;  %v852_v62 = vadd.f32 %v851_v16, %v788_v59  ;;  %vm2272_vm15 = vnez %v2195_v3  ;;  %v2316_v16 = vld [vmem:[#allocation16_spill] sm:$0xff] }
 0x14d   :  { %vm2268_vm1 = vmand %vm2259_vm12, %vm1807_vm11  ;;  %v794_v61 = vsel %vm762_vm6, %v1419_v54, 0.0  ;;  %v859_v56 = vadd.f32 %v793_v5, %v792_v34  ;;  %v888_v10 = vadd.f32 %v980_v25, %v887_v33  ;;  %vm2276_vm3 = vnez %v2197_v22  ;;  %v2314_v25 = vld [vmem:[#allocation13_spill] sm:$0xff] }
 0x14e   :  { %v789_v43 = vsel %vm2268_vm1, %v1401_v6, 0.0  ;;  %vm2269_vm13 = vmmov %vm2268_vm1  ;;  %v2274_v6 = vld [vmem:[#allocation17_spill] sm:$0xff]  ;;  %vm2277_vm1 = vmmov 1  }
 0x14f   :  { %v981_v11 = vsel %vm2269_vm13, 1.0, %v1074_v2  ;;  %vm763_vm4 = vmand %vm2271_vm10, %vm2270_vm14  ;;  %v853_v3 = vadd.f32 %v852_v62, %v789_v43  ;;  %v860_v19 = vadd.f32 %v859_v56, %v794_v61  ;;  %vm2278_vm13 = vnez %v2146_v28  ;;  %v2317_v43 = vld [vmem:[#allocation20_spill] sm:$0xff] }
 0x150   :  { %vm764_vm8 = vmand %vm1866_vm5, %vm2272_vm15  ;;  %v795_v58 = vsel %vm763_vm4, %v2274_v6, 0.0  ;;  %v889_v20 = vadd.f32 %v981_v11, %v888_v10  ;;  %vm2281_vm10 = vnez %v2170_v4  ;;  %vm2282_vm4 = vnez %v2249_v35  ;;  %v858_v4 = vld [vmem:[#allocation5 + $0x8] sm:$0xff] }
 0x151   :  { %vm2273_vm0 = vmand %vm2260_vm7, %vm1836_vm9  ;;  %v796_v29 = vsel %vm764_vm8, %v2284_v45, 0.0  ;;  %v861_v40 = vadd.f32 %v860_v19, %v795_v58  ;;  %vm2292_vm8 = vnez %v2201_v57 }
 0x152   :  { %v790_v63 = vsel %vm2273_vm0, %v1428_v15, 0.0  ;;  %vm2275_vm6 = vmmov %vm2273_vm0  ;;  %vm2286_vm0 = vnez %v2199_v14 }
 0x153   :  { %v982_v54 = vsel %vm2275_vm6, 1.0, %v1074_v2  ;;  %vm765_vm5 = vmand %vm1879_vm2, %vm2276_vm3  ;;  %vm2287_vm6 = vnez %v2258_v44  ;;  %v854_v50 = vadd.f32 %v853_v3, %v790_v63 }
 0x154   :  { %vm1973_vm14 = vmxor %vm2278_vm13, %vm2277_vm1  ;;  %v890_v12 = vadd.f32 %v982_v54, %v889_v20  ;;  %vm2288_vm13 = vnez %v2164_v48  ;;  %v797_v41 = vsel %vm765_vm5, %v2291_v38, 0.0  ;;  %vm2297_vm5 = vnez %v2203_v47 }
 0x155   :  { %vm2283_vm15 = vmand %vm2281_vm10, %vm2282_vm4 }
 0x156   :  { %v791_v22 = vsel %vm2283_vm15, %v1452_v23, 0.0  ;;  %vm2285_vm2 = vmmov %vm2283_vm15 }
 0x157   :  { %v983_v28 = vsel %vm2285_vm2, 1.0, %v1074_v2  ;;  %vm766_vm3 = vmand %vm2287_vm6, %vm2286_vm0  ;;  %v855_v14 = vadd.f32 %v854_v50, %v791_v22  ;;  %v862_v2 = vadd.f32 %v861_v40, %v796_v29  ;;  %vm2293_vm0 = vnez %v2162_v46  ;;  %v2301_v46 = vld [vmem:[#allocation18_spill] sm:$0xff] }
 0x158   :  { %vm1997_vm15 = vmxor %vm2288_vm13, %vm2277_vm1  ;;  %v891_v24 = vadd.f32 %v983_v28, %v890_v12  ;;  %v798_v13 = vsel %vm766_vm3, %v2296_v9, 0.0 }
 0x159   :  { %vm767_vm2 = vmand %vm1973_vm14, %vm2292_vm8  ;;  %v856_v57 = vadd.f32 %v855_v14, %v840_v39  ;;  %v863_v60 = vadd.f32 %v862_v2, %v797_v41  ;;  %vm2298_vm14 = vnez %v2148_v32 }
 0x15a   :  { %vm2009_vm6 = vmxor %vm2293_vm0, %vm2277_vm1  ;;  %v892_v44 = vadd.f32 %v891_v24, %v876_v17  ;;  %v799_v21 = vsel %vm767_vm2, %v2301_v46, 0.0  ;;  %vm2302_vm0 = vnez %v2205_v49  ;;  %vm2306_vm2 = vnez %v2166_v51  ;;  %v2307_v49 = vld [vmem:[#allocation12_spill] sm:$0xff]  ;;  %v2311_v51 = vld [vmem:[#allocation19_spill] sm:$0xff] }
 0x15b   :  { %vm768_vm13 = vmand %vm1997_vm15, %vm2297_vm5  ;;  %857 = vst [vmem:[#allocation5] sm:$0xff] %v856_v57  ;;  %v864_v47 = vadd.f32 %v863_v60, %v798_v13  ;;  %vm2303_vm15 = vnez %v2168_v55 }
 0x15c   :  { %vm2021_vm8 = vmxor %vm2298_vm14, %vm2277_vm1  ;;  %v800_v7 = vsel %vm768_vm13, %v2304_v53, 0.0  ;;  %893 = vst [vmem:[#allocation5 + $0x10] sm:$0xff] %v892_v44  ;;  %vm2305_vm14 = vnez %v2213_v26 }
 0x15d   :  { %vm769_vm3 = vmand %vm2009_vm6, %vm2302_vm0  ;;  %v865_v32 = vadd.f32 %v864_v47, %v799_v21  ;;  %vm2308_vm6 = vnez %v2217_v1 }
 0x15e   :  { %vm755_vm5 = vmxor %vm2303_vm15, %vm2277_vm1  ;;  %v801_v42 = vsel %vm769_vm3, %v2307_v49, 0.0  ;;  %vm2310_vm15 = vnez %v2221_v0 }
 0x15f   :  { %vm770_vm4 = vmand %vm2021_vm8, %vm2305_vm14  ;;  %v866_v55 = vadd.f32 %v865_v32, %v800_v7 }
 0x160   :  { %vm756_vm9 = vmxor %vm2306_vm2, %vm2277_vm1  ;;  %v802_v26 = vsel %vm770_vm4, %v2309_v27, 0.0  ;;  %vm2313_vm4 = vnez %v2237_v31 }
 0x161   :  { %vm771_vm0 = vmand %vm755_vm5, %vm2308_vm6  ;;  %v867_v8 = vadd.f32 %v866_v55, %v801_v42 }
 0x162   :  { %vm757_vm13 = vmxor %vm2259_vm12, %vm2277_vm1  ;;  %v803_v52 = vsel %vm771_vm0, %v2311_v51, 0.0 }
 0x163   :  { %vm772_vm8 = vmand %vm756_vm9, %vm2310_vm15  ;;  %v868_v1 = vadd.f32 %v867_v8, %v802_v26 }
 0x164   :  { %vm758_vm14 = vmxor %vm2260_vm7, %vm2277_vm1  ;;  %v804_v59 = vsel %vm772_vm8, %v2312_v37, 0.0  ;;  %vm2315_vm7 = vnez %v2249_v35 }
 0x165   :  { %vm773_vm3 = vmand %vm757_vm13, %vm1807_vm11  ;;  %v869_v0 = vadd.f32 %v868_v1, %v803_v52 }
 0x166   :  { %vm759_vm12 = vmxor %vm2281_vm10, %vm2277_vm1  ;;  %v805_v34 = vsel %vm773_vm3, %v2314_v25, 0.0 }
 0x167   :  { %vm774_vm9 = vmand %vm758_vm14, %vm2313_vm4  ;;  %v870_v30 = vadd.f32 %v869_v0, %v804_v59 }
 0x168   :  { %vm775_vm5 = vmand %vm759_vm12, %vm2315_vm7  ;;  %v806_v36 = vsel %vm774_vm9, %v2316_v16, 0.0 }
 0x169   :  { %v871_v33 = vadd.f32 %v870_v30, %v805_v34  ;;  %v807_v5 = vsel %vm775_vm5, %v2317_v43, 0.0 }
 0x16b   :  { %v872_v11 = vadd.f32 %v871_v33, %v806_v36 }
 0x16d   :  { %v873_v61 = vadd.f32 %v872_v11, %v807_v5 }
 0x16f   :  { %v874_v62 = vadd.f32 %v873_v61, %v858_v4 }
 0x171   :  { %875 = vst [vmem:[#allocation5 + $0x8] sm:$0xff] %v874_v62 }
 0x172 PF:  { %s900_s25 = sshll.u32 %s2078_s8, 4  ;;  %s1076_s26 = smov [#allocation5]   ;;  %s901_s25 = int_to_ptr.hbm [resolvable:$true] %s900_s25 }
 0x173   :  { %s898_s27 = sshll.u32 %s1076_s26, 4  ;;  %s1077_s28 = smov 128   ;;  %s899_s27 = int_to_ptr.vmem [resolvable:$true] %s898_s27 }
 0x174   :  { %s1078_s29 = smov 8  }
 0x175   :  { %906 = dma.vmem_to_hbm [thread:$0]  %s899_s27, 384, %s901_s25, [#allocation6], %s1077_s28, %s1077_s28, %s1078_s29  }
 0x176   :  { %1069 = dma.done.wait [#allocation6], 384  }
 0x177   :  { %1070 = vsyncadd [#allocation6], 4294966912 }
 0x178   :  { %911 = vsyncpa [#allocation6], 1 }

</bundles_post_ra>
